<compile_context>
chip_gen: v5e
topology: v5e:2x2
jax: 0.10.0
libtpu: 0.0.40
codegen_flags: <defaults>
</compile_context>

<pallas_src>
import functools

import numpy as np

import jax
import jax.numpy as jnp
from jax import lax
from jax.experimental import pallas as pl
from jax.experimental.pallas import tpu as pltpu


def _round_up(x, m):
    return ((x + m - 1) // m) * m


def conv_layer_dims(num_rows, num_cols, num_kernel, kh, kw, num_cnn_layers):
    """Static per-conv-layer geometry (matches Conv2d 'valid' + MaxPool2d(2))."""
    dims = []
    h, w, cin, woff, boff = num_rows, num_cols, 1, 0, 0
    for _ in range(num_cnn_layers):
        hc, wc = h - kh + 1, w - kw + 1      # conv output (valid)
        hp, wp = hc // 2, wc // 2            # pooled output (floor)
        assert hp >= 1 and wp >= 1, "spatial dims collapsed to zero"
        dims.append(dict(cin=cin, k=num_kernel, kh=kh, kw=kw, h=h, w=w,
                         hc=hc, wc=wc, hp=hp, wp=wp, woff=woff, boff=boff))
        woff += num_kernel * cin * kh * kw
        boff += num_kernel
        h, w, cin = hp, wp, num_kernel
    fc_in = num_kernel * h * w               # == PopPhyCNN._compute_fc_layer_in_features
    return dims, fc_in


# -----------------------------------------------------------------------------
# Fused kernel: conv stack -> lane-dense feature slab -> MLP head.
# -----------------------------------------------------------------------------
def make_fused_kernel(dims, n_mlp):
    n_conv = len(dims)

    def kernel(x_ref, cw_ref, cb_ref, *refs):
        mlp_refs = refs[:2 * n_mlp]          # (w0, b0, w1, b1, ...)
        o_ref = refs[2 * n_mlp]
        lhs_ref = refs[2 * n_mlp + 1]        # (bt, Kpad) f32 scratch feature slab
        bt = x_ref.shape[0]

        # Zero once per step so padding lanes (never written below) are exact 0.
        lhs_ref[...] = jnp.zeros(lhs_ref.shape, jnp.float32)

        chans = [x_ref[...]]                 # list of (bt, h, w) f32 channel planes
        for li, m in enumerate(dims):
            cin, k, kh, kw = m["cin"], m["k"], m["kh"], m["kw"]
            hc, wc, hp, wp = m["hc"], m["wc"], m["hp"], m["wp"]
            last = li == n_conv - 1
            # Hoist the kh*kw shifted windows out of the output-channel loop.
            wins = [[[chans[c][:, dy:dy + hc, dx:dx + wc] for dx in range(kw)]
                     for dy in range(kh)] for c in range(cin)]
            if not last:
                # Column-decimation 0/1 matrix (only for intermediate conv layers).
                rj = lax.broadcasted_iota(jnp.int32, (wc - 1, wp), 0)
                cj = lax.broadcasted_iota(jnp.int32, (wc - 1, wp), 1)
                sel_w = (rj == 2 * cj).astype(jnp.float32)
            next_chans = []
            for ko in range(k):
                # TODO(synk): for large cin (deep conv stacks) switch to im2col + MXU.
                acc = jnp.zeros((bt, hc, wc), jnp.float32)
                for c in range(cin):
                    for dy in range(kh):
                        for dx in range(kw):
                            wv = cw_ref[m["woff"] + ((ko * cin + c) * kh + dy) * kw + dx]
                            acc = acc + wv * wins[c][dy][dx]
                acc = jnp.maximum(acc + cb_ref[m["boff"] + ko], 0.0)   # bias + ReLU
                # 2x2 / stride-2 max-pool, step 1: pairwise maxes.
                mw = jnp.maximum(acc[:, :, 0:wc - 1], acc[:, :, 1:wc])  # (bt, hc, wc-1)
                mh = jnp.maximum(mw[:, 0:hc - 1, :], mw[:, 1:hc, :])    # (bt, hc-1, wc-1)
                if last:
                    # Step 2 (decimation) + flatten are folded into the first FC
                    # weight matrix (host side); just lay even rows into the slab.
                    for i in range(hp):
                        off = (ko * hp + i) * (wc - 1)
                        lhs_ref[:, off:off + (wc - 1)] = mh[:, 2 * i, :]
                else:
                    rows = [jnp.dot(mh[:, 2 * i, :], sel_w,
                                    preferred_element_type=jnp.float32)[:, None, :]
                            for i in range(hp)]
                    next_chans.append(jnp.concatenate(rows, axis=1))    # (bt, hp, wp)
            if not last:
                chans = next_chans

        # Fused MLP head over the lane-dense 128-padded feature slab.
        h_act = lhs_ref[...].astype(jnp.bfloat16)
        for i in range(n_mlp):
            w_ref, b_ref = mlp_refs[2 * i], mlp_refs[2 * i + 1]
            z = jnp.dot(h_act, w_ref[...], preferred_element_type=jnp.float32) + b_ref[...]
            if i < n_mlp - 1:
                h_act = jnp.maximum(z, 0.0).astype(jnp.bfloat16)        # ReLU
            else:
                o_ref[...] = z

    return kernel


def popphy_cnn_forward(x, prepared, *, dims, out_features):
    """Eval-mode forward. GaussianNoise and Dropout are identity at inference."""
    # TODO(synk): training-mode GaussianNoise / Dropout (stochastic) not implemented.
    bsz, rows, cols = x.shape
    n_mlp = len(prepared["mlp_w"])
    kpad = prepared["mlp_w"][0].shape[0]
    opad = prepared["mlp_w"][-1].shape[1]
    bt = bsz if bsz <= 128 else 128          # whole batch in one step when small

    in_specs = [
        pl.BlockSpec((bt, rows, cols), lambda i: (i, 0, 0)),
        pl.BlockSpec(memory_space=pltpu.SMEM),   # flattened conv weights (scalars)
        pl.BlockSpec(memory_space=pltpu.SMEM),   # flattened conv biases  (scalars)
    ]
    args = [x.astype(jnp.float32), prepared["conv_w"], prepared["conv_b"]]

    flops = 0
    for m in dims:
        flops += 2 * bsz * m["k"] * m["cin"] * m["kh"] * m["kw"] * m["hc"] * m["wc"]
    for w_, b_ in zip(prepared["mlp_w"], prepared["mlp_b"]):
        in_specs.append(pl.BlockSpec(w_.shape, lambda i: (0, 0)))   # VMEM-resident
        in_specs.append(pl.BlockSpec(b_.shape, lambda i: (0, 0)))   # VMEM-resident
        args += [w_, b_]
        flops += 2 * bsz * w_.shape[0] * w_.shape[1]
    bytes_accessed = (4 * x.size + 4 * prepared["conv_w"].size
                      + 4 * prepared["conv_b"].size
                      + sum(2 * w_.size for w_ in prepared["mlp_w"])
                      + sum(4 * b_.size for b_ in prepared["mlp_b"])
                      + 4 * bsz * opad)

    out = pl.pallas_call(
        make_fused_kernel(dims, n_mlp),
        out_shape=jax.ShapeDtypeStruct((bsz, opad), jnp.float32),
        grid=(pl.cdiv(bsz, bt),),
        in_specs=in_specs,
        out_specs=pl.BlockSpec((bt, opad), lambda i: (i, 0)),
        scratch_shapes=[pltpu.VMEM((bt, kpad), jnp.float32)],
        compiler_params=pltpu.CompilerParams(dimension_semantics=("parallel",)),
        cost_estimate=pl.CostEstimate(flops=flops, transcendentals=0,
                                      bytes_accessed=bytes_accessed),
    )(*args)
    return out[:, :out_features]             # drop lane padding


# -----------------------------------------------------------------------------
# Parameters, host-side repacking, reference.
# -----------------------------------------------------------------------------
def init_popphy_params(key, *, num_rows, num_cols, out_features, num_kernel,
                       kernel_height, kernel_width, num_fc_nodes,
                       num_cnn_layers, num_fc_layers):
    """PyTorch-default init U(-1/sqrt(fan_in), 1/sqrt(fan_in)); FC/output weights
    stored (in, out) bf16 (the matmul operand dtype), biases f32."""
    dims, fc_in = conv_layer_dims(num_rows, num_cols, num_kernel,
                                  kernel_height, kernel_width, num_cnn_layers)
    keys = jax.random.split(key, 2 * (num_cnn_layers + num_fc_layers + 1))
    ki = 0
    params = {"conv": [], "fc": [], "out": None}
    for m in dims:
        fan_in = m["cin"] * kernel_height * kernel_width
        bound = 1.0 / (fan_in ** 0.5)
        wc_ = jax.random.uniform(keys[ki],
                                 (num_kernel, m["cin"], kernel_height, kernel_width),
                                 jnp.float32, -bound, bound)
        bc_ = jax.random.uniform(keys[ki + 1], (num_kernel,), jnp.float32, -bound, bound)
        ki += 2
        params["conv"].append((wc_, bc_))
    in_dim = fc_in
    for _ in range(num_fc_layers):
        bound = 1.0 / (in_dim ** 0.5)
        wf = jax.random.uniform(keys[ki], (in_dim, num_fc_nodes), jnp.float32,
                                -bound, bound).astype(jnp.bfloat16)
        bf = jax.random.uniform(keys[ki + 1], (num_fc_nodes,), jnp.float32, -bound, bound)
        ki += 2
        params["fc"].append((wf, bf))
        in_dim = num_fc_nodes
    bound = 1.0 / (in_dim ** 0.5)
    wo = jax.random.uniform(keys[ki], (in_dim, out_features), jnp.float32,
                            -bound, bound).astype(jnp.bfloat16)
    bo = jax.random.uniform(keys[ki + 1], (out_features,), jnp.float32, -bound, bound)
    params["out"] = (wo, bo)
    return params, dims, fc_in


def prepare_kernel_params(params, dims):
    """One-time host-side repack: conv weights flattened for SMEM; the max-pool
    column decimation + (C,H,W) flatten folded into the first FC weight (exact 0/1
    row rearrangement); all FC dims zero-padded to 128-lane multiples (exact:
    padded columns get bias 0 -> ReLU(0)=0, padded rows multiply zeros)."""
    prepared = {
        "conv_w": jnp.concatenate([w.reshape(-1) for (w, _) in params["conv"]]),
        "conv_b": jnp.concatenate([b for (_, b) in params["conv"]]),
    }
    last = dims[-1]
    k, wc, hp, wp = last["k"], last["wc"], last["hp"], last["wp"]
    kpad = _round_up(k * hp * (wc - 1), 128)

    mlp_layers = list(params["fc"]) + [params["out"]]
    weights, biases = [], []

    # First layer: rows rearranged so lhs column (ko*hp+i)*(wc-1) + 2j maps to
    # flattened feature index (ko*hp + i)*wp + j; odd/unused lhs columns get 0 rows.
    w0 = np.asarray(jnp.asarray(mlp_layers[0][0], jnp.float32))      # (fc_in, n0)
    n0 = w0.shape[1]
    n0_pad = _round_up(n0, 128)
    w0_eff = np.zeros((kpad, n0_pad), np.float32)
    for blk in range(k * hp):                                        # blk = ko*hp + i
        dst = blk * (wc - 1) + 2 * np.arange(wp)
        w0_eff[dst, :n0] = w0[blk * wp:(blk + 1) * wp, :]
    weights.append(jnp.asarray(w0_eff, jnp.bfloat16))
    biases.append(jnp.zeros((1, n0_pad), jnp.float32).at[0, :n0].set(mlp_layers[0][1]))

    in_dim, in_pad = n0, n0_pad
    for (wl, bl) in mlp_layers[1:]:
        out_dim = wl.shape[1]
        out_pad = _round_up(out_dim, 128)
        weights.append(jnp.zeros((in_pad, out_pad), jnp.bfloat16)
                       .at[:in_dim, :out_dim].set(wl))
        biases.append(jnp.zeros((1, out_pad), jnp.float32).at[0, :out_dim].set(bl))
        in_dim, in_pad = out_dim, out_pad
    prepared["mlp_w"] = weights
    prepared["mlp_b"] = biases
    return prepared


def popphy_cnn_reference(x, params):
    """Pure-JAX f32 reference matching the PyTorch eval-mode forward."""
    h = x[:, None, :, :].astype(jnp.float32)
    for (wc_, bc_) in params["conv"]:
        h = lax.conv_general_dilated(h, wc_, (1, 1), "VALID",
                                     dimension_numbers=("NCHW", "OIHW", "NCHW"),
                                     precision=lax.Precision.HIGHEST)
        h = jnp.maximum(h + bc_.reshape(1, -1, 1, 1), 0.0)
        h = lax.reduce_window(h, -jnp.inf, lax.max, (1, 1, 2, 2), (1, 1, 2, 2), "VALID")
    h = h.reshape(h.shape[0], -1)
    for (wf, bf) in params["fc"]:
        h = jnp.maximum(jnp.dot(h, wf.astype(jnp.float32),
                                precision=lax.Precision.HIGHEST) + bf, 0.0)
    wo, bo = params["out"]
    return jnp.dot(h, wo.astype(jnp.float32), precision=lax.Precision.HIGHEST) + bo


if __name__ == "__main__":
    key = jax.random.PRNGKey(0)
    k_params, k_x = jax.random.split(key)

    # Small PopPhyCNN config: tree with max_depth+1 = 8 rows and 16 leaves.
    batch = 4
    num_rows, num_cols = 8, 16
    out_features = 16
    num_kernel = 4
    kernel_height = kernel_width = 3
    num_fc_nodes = 32
    num_cnn_layers = 1
    num_fc_layers = 2
    # dropout probability is irrelevant at inference.

    params, dims, fc_in = init_popphy_params(
        k_params, num_rows=num_rows, num_cols=num_cols, out_features=out_features,
        num_kernel=num_kernel, kernel_height=kernel_height,
        kernel_width=kernel_width, num_fc_nodes=num_fc_nodes,
        num_cnn_layers=num_cnn_layers, num_fc_layers=num_fc_layers)
    prepared = prepare_kernel_params(params, dims)

    x = jax.random.normal(k_x, (batch, num_rows, num_cols), jnp.float32)

    fwd = jax.jit(functools.partial(popphy_cnn_forward, dims=dims,
                                    out_features=out_features))
    out = jax.block_until_ready(fwd(x, prepared))

    ref = popphy_cnn_reference(x, params)
    assert out.shape == (batch, out_features), out.shape
    max_err = float(jnp.max(jnp.abs(out - ref)))
    # bf16 matmul operands with f32 accumulation -> loosened tolerance vs f32 reference.
    assert jnp.allclose(out, ref, atol=5e-2, rtol=5e-2), f"max_err={max_err}"

    print("KERNEL_OK")
</pallas_src>

<mosaic_0001>
module attributes {stable_mosaic.version = 11 : i64} {
  func.func @kernel(%arg0: i32, %arg1: memref<4x8x16xf32, #tpu.memory_space<vmem>>, %arg2: memref<36xf32, #tpu.memory_space<smem>>, %arg3: memref<4xf32, #tpu.memory_space<smem>>, %arg4: memref<256x128xbf16, #tpu.memory_space<vmem>>, %arg5: memref<1x128xf32, #tpu.memory_space<vmem>>, %arg6: memref<128x128xbf16, #tpu.memory_space<vmem>>, %arg7: memref<1x128xf32, #tpu.memory_space<vmem>>, %arg8: memref<128x128xbf16, #tpu.memory_space<vmem>>, %arg9: memref<1x128xf32, #tpu.memory_space<vmem>>, %arg10: memref<4x128xf32, #tpu.memory_space<vmem>>, %arg11: memref<4x256xf32, #tpu.memory_space<vmem>>) attributes {dimension_semantics = [#tpu.dimension_semantics<parallel>], iteration_bounds = array<i64: 1>, scalar_prefetch = 0 : i64, scratch_operands = 1 : i64, tpu.core_type = #tpu.core_type<tc>, window_params = [{transform_indices = @transform_0, window_bounds = array<i64: 4, 8, 16>}, {transform_indices = @transform_1, window_bounds = array<i64: 36>}, {transform_indices = @transform_2, window_bounds = array<i64: 4>}, {pipeline_mode = #tpu.pipeline_mode<synchronous>, transform_indices = @transform_3, window_bounds = array<i64: 256, 128>}, {pipeline_mode = #tpu.pipeline_mode<synchronous>, transform_indices = @transform_4, window_bounds = array<i64: 1, 128>}, {pipeline_mode = #tpu.pipeline_mode<synchronous>, transform_indices = @transform_5, window_bounds = array<i64: 128, 128>}, {pipeline_mode = #tpu.pipeline_mode<synchronous>, transform_indices = @transform_6, window_bounds = array<i64: 1, 128>}, {pipeline_mode = #tpu.pipeline_mode<synchronous>, transform_indices = @transform_7, window_bounds = array<i64: 128, 128>}, {pipeline_mode = #tpu.pipeline_mode<synchronous>, transform_indices = @transform_8, window_bounds = array<i64: 1, 128>}, {transform_indices = @transform_9, window_bounds = array<i64: 4, 128>}]} {
    %cst = arith.constant 0.000000e+00 : f32
    %0 = vector.broadcast %cst : f32 to vector<4x256xf32>
    %c0 = arith.constant 0 : index
    %c0_0 = arith.constant 0 : index
    %1 = vector.load %arg11[%c0, %c0_0] : memref<4x256xf32, #tpu.memory_space<vmem>>, vector<4x256xf32>
    tpu.vector_store %arg11[%c0, %c0_0], %0 {strides = array<i32>} : memref<4x256xf32, #tpu.memory_space<vmem>>, vector<4x256xf32>,
    %c0_1 = arith.constant 0 : index
    %c0_2 = arith.constant 0 : index
    %c0_3 = arith.constant 0 : index
    %2 = vector.load %arg1[%c0_1, %c0_2, %c0_3] : memref<4x8x16xf32, #tpu.memory_space<vmem>>, vector<4x8x16xf32>
    %3 = vector.extract_strided_slice %2 {offsets = [0, 0, 0], sizes = [4, 6, 14], strides = [1, 1, 1]} : vector<4x8x16xf32> to vector<4x6x14xf32>
    %4 = vector.extract_strided_slice %2 {offsets = [0, 0, 1], sizes = [4, 6, 14], strides = [1, 1, 1]} : vector<4x8x16xf32> to vector<4x6x14xf32>
    %5 = vector.extract_strided_slice %2 {offsets = [0, 0, 2], sizes = [4, 6, 14], strides = [1, 1, 1]} : vector<4x8x16xf32> to vector<4x6x14xf32>
    %6 = vector.extract_strided_slice %2 {offsets = [0, 1, 0], sizes = [4, 6, 14], strides = [1, 1, 1]} : vector<4x8x16xf32> to vector<4x6x14xf32>
    %7 = vector.extract_strided_slice %2 {offsets = [0, 1, 1], sizes = [4, 6, 14], strides = [1, 1, 1]} : vector<4x8x16xf32> to vector<4x6x14xf32>
    %8 = vector.extract_strided_slice %2 {offsets = [0, 1, 2], sizes = [4, 6, 14], strides = [1, 1, 1]} : vector<4x8x16xf32> to vector<4x6x14xf32>
    %9 = vector.extract_strided_slice %2 {offsets = [0, 2, 0], sizes = [4, 6, 14], strides = [1, 1, 1]} : vector<4x8x16xf32> to vector<4x6x14xf32>
    %10 = vector.extract_strided_slice %2 {offsets = [0, 2, 1], sizes = [4, 6, 14], strides = [1, 1, 1]} : vector<4x8x16xf32> to vector<4x6x14xf32>
    %11 = vector.extract_strided_slice %2 {offsets = [0, 2, 2], sizes = [4, 6, 14], strides = [1, 1, 1]} : vector<4x8x16xf32> to vector<4x6x14xf32>
    %cst_4 = arith.constant 0.000000e+00 : f32
    %12 = vector.broadcast %cst_4 : f32 to vector<4x6x14xf32>
    %c0_5 = arith.constant 0 : index
    %13 = memref.load %arg2[%c0_5] : memref<36xf32, #tpu.memory_space<smem>>
    %14 = vector.broadcast %13 : f32 to vector<4x6x14xf32>
    %15 = arith.mulf %14, %3 : vector<4x6x14xf32>
    %16 = arith.addf %12, %15 : vector<4x6x14xf32>
    %c1 = arith.constant 1 : index
    %17 = memref.load %arg2[%c1] : memref<36xf32, #tpu.memory_space<smem>>
    %18 = vector.broadcast %17 : f32 to vector<4x6x14xf32>
    %19 = arith.mulf %18, %4 : vector<4x6x14xf32>
    %20 = arith.addf %16, %19 : vector<4x6x14xf32>
    %c2 = arith.constant 2 : index
    %21 = memref.load %arg2[%c2] : memref<36xf32, #tpu.memory_space<smem>>
    %22 = vector.broadcast %21 : f32 to vector<4x6x14xf32>
    %23 = arith.mulf %22, %5 : vector<4x6x14xf32>
    %24 = arith.addf %20, %23 : vector<4x6x14xf32>
    %c3 = arith.constant 3 : index
    %25 = memref.load %arg2[%c3] : memref<36xf32, #tpu.memory_space<smem>>
    %26 = vector.broadcast %25 : f32 to vector<4x6x14xf32>
    %27 = arith.mulf %26, %6 : vector<4x6x14xf32>
    %28 = arith.addf %24, %27 : vector<4x6x14xf32>
    %c4 = arith.constant 4 : index
    %29 = memref.load %arg2[%c4] : memref<36xf32, #tpu.memory_space<smem>>
    %30 = vector.broadcast %29 : f32 to vector<4x6x14xf32>
    %31 = arith.mulf %30, %7 : vector<4x6x14xf32>
    %32 = arith.addf %28, %31 : vector<4x6x14xf32>
    %c5 = arith.constant 5 : index
    %33 = memref.load %arg2[%c5] : memref<36xf32, #tpu.memory_space<smem>>
    %34 = vector.broadcast %33 : f32 to vector<4x6x14xf32>
    %35 = arith.mulf %34, %8 : vector<4x6x14xf32>
    %36 = arith.addf %32, %35 : vector<4x6x14xf32>
    %c6 = arith.constant 6 : index
    %37 = memref.load %arg2[%c6] : memref<36xf32, #tpu.memory_space<smem>>
    %38 = vector.broadcast %37 : f32 to vector<4x6x14xf32>
    %39 = arith.mulf %38, %9 : vector<4x6x14xf32>
    %40 = arith.addf %36, %39 : vector<4x6x14xf32>
    %c7 = arith.constant 7 : index
    %41 = memref.load %arg2[%c7] : memref<36xf32, #tpu.memory_space<smem>>
    %42 = vector.broadcast %41 : f32 to vector<4x6x14xf32>
    %43 = arith.mulf %42, %10 : vector<4x6x14xf32>
    %44 = arith.addf %40, %43 : vector<4x6x14xf32>
    %c8 = arith.constant 8 : index
    %45 = memref.load %arg2[%c8] : memref<36xf32, #tpu.memory_space<smem>>
    %46 = vector.broadcast %45 : f32 to vector<4x6x14xf32>
    %47 = arith.mulf %46, %11 : vector<4x6x14xf32>
    %48 = arith.addf %44, %47 : vector<4x6x14xf32>
    %c0_6 = arith.constant 0 : index
    %49 = memref.load %arg3[%c0_6] : memref<4xf32, #tpu.memory_space<smem>>
    %50 = vector.broadcast %49 : f32 to vector<4x6x14xf32>
    %51 = arith.addf %48, %50 : vector<4x6x14xf32>
    %cst_7 = arith.constant 0.000000e+00 : f32
    %52 = vector.broadcast %cst_7 : f32 to vector<4x6x14xf32>
    %53 = arith.maximumf %51, %52 : vector<4x6x14xf32>
    %54 = vector.extract_strided_slice %53 {offsets = [0, 0, 0], sizes = [4, 6, 13], strides = [1, 1, 1]} : vector<4x6x14xf32> to vector<4x6x13xf32>
    %55 = vector.extract_strided_slice %53 {offsets = [0, 0, 1], sizes = [4, 6, 13], strides = [1, 1, 1]} : vector<4x6x14xf32> to vector<4x6x13xf32>
    %56 = arith.maximumf %54, %55 : vector<4x6x13xf32>
    %57 = vector.extract_strided_slice %56 {offsets = [0, 0, 0], sizes = [4, 5, 13], strides = [1, 1, 1]} : vector<4x6x13xf32> to vector<4x5x13xf32>
    %58 = vector.extract_strided_slice %56 {offsets = [0, 1, 0], sizes = [4, 5, 13], strides = [1, 1, 1]} : vector<4x6x13xf32> to vector<4x5x13xf32>
    %59 = arith.maximumf %57, %58 : vector<4x5x13xf32>
    %60 = vector.extract_strided_slice %59 {offsets = [0, 0, 0], sizes = [4, 1, 13], strides = [1, 1, 1]} : vector<4x5x13xf32> to vector<4x1x13xf32>
    %61 = vector.shape_cast %60 : vector<4x1x13xf32> to vector<4x13xf32>
    %c0_8 = arith.constant 0 : index
    %c0_9 = arith.constant 0 : index
    %62 = vector.load %arg11[%c0_8, %c0_9] : memref<4x256xf32, #tpu.memory_space<vmem>>, vector<4x13xf32>
    tpu.vector_store %arg11[%c0_8, %c0_9], %61 {strides = array<i32>} : memref<4x256xf32, #tpu.memory_space<vmem>>, vector<4x13xf32>,
    %63 = vector.extract_strided_slice %59 {offsets = [0, 2, 0], sizes = [4, 1, 13], strides = [1, 1, 1]} : vector<4x5x13xf32> to vector<4x1x13xf32>
    %64 = vector.shape_cast %63 : vector<4x1x13xf32> to vector<4x13xf32>
    %c0_10 = arith.constant 0 : index
    %c13 = arith.constant 13 : index
    %65 = vector.load %arg11[%c0_10, %c13] : memref<4x256xf32, #tpu.memory_space<vmem>>, vector<4x13xf32>
    tpu.vector_store %arg11[%c0_10, %c13], %64 {strides = array<i32>} : memref<4x256xf32, #tpu.memory_space<vmem>>, vector<4x13xf32>,
    %66 = vector.extract_strided_slice %59 {offsets = [0, 4, 0], sizes = [4, 1, 13], strides = [1, 1, 1]} : vector<4x5x13xf32> to vector<4x1x13xf32>
    %67 = vector.shape_cast %66 : vector<4x1x13xf32> to vector<4x13xf32>
    %c0_11 = arith.constant 0 : index
    %c26 = arith.constant 26 : index
    %68 = vector.load %arg11[%c0_11, %c26] : memref<4x256xf32, #tpu.memory_space<vmem>>, vector<4x13xf32>
    tpu.vector_store %arg11[%c0_11, %c26], %67 {strides = array<i32>} : memref<4x256xf32, #tpu.memory_space<vmem>>, vector<4x13xf32>,
    %cst_12 = arith.constant 0.000000e+00 : f32
    %69 = vector.broadcast %cst_12 : f32 to vector<4x6x14xf32>
    %c9 = arith.constant 9 : index
    %70 = memref.load %arg2[%c9] : memref<36xf32, #tpu.memory_space<smem>>
    %71 = vector.broadcast %70 : f32 to vector<4x6x14xf32>
    %72 = arith.mulf %71, %3 : vector<4x6x14xf32>
    %73 = arith.addf %69, %72 : vector<4x6x14xf32>
    %c10 = arith.constant 10 : index
    %74 = memref.load %arg2[%c10] : memref<36xf32, #tpu.memory_space<smem>>
    %75 = vector.broadcast %74 : f32 to vector<4x6x14xf32>
    %76 = arith.mulf %75, %4 : vector<4x6x14xf32>
    %77 = arith.addf %73, %76 : vector<4x6x14xf32>
    %c11 = arith.constant 11 : index
    %78 = memref.load %arg2[%c11] : memref<36xf32, #tpu.memory_space<smem>>
    %79 = vector.broadcast %78 : f32 to vector<4x6x14xf32>
    %80 = arith.mulf %79, %5 : vector<4x6x14xf32>
    %81 = arith.addf %77, %80 : vector<4x6x14xf32>
    %c12 = arith.constant 12 : index
    %82 = memref.load %arg2[%c12] : memref<36xf32, #tpu.memory_space<smem>>
    %83 = vector.broadcast %82 : f32 to vector<4x6x14xf32>
    %84 = arith.mulf %83, %6 : vector<4x6x14xf32>
    %85 = arith.addf %81, %84 : vector<4x6x14xf32>
    %c13_13 = arith.constant 13 : index
    %86 = memref.load %arg2[%c13_13] : memref<36xf32, #tpu.memory_space<smem>>
    %87 = vector.broadcast %86 : f32 to vector<4x6x14xf32>
    %88 = arith.mulf %87, %7 : vector<4x6x14xf32>
    %89 = arith.addf %85, %88 : vector<4x6x14xf32>
    %c14 = arith.constant 14 : index
    %90 = memref.load %arg2[%c14] : memref<36xf32, #tpu.memory_space<smem>>
    %91 = vector.broadcast %90 : f32 to vector<4x6x14xf32>
    %92 = arith.mulf %91, %8 : vector<4x6x14xf32>
    %93 = arith.addf %89, %92 : vector<4x6x14xf32>
    %c15 = arith.constant 15 : index
    %94 = memref.load %arg2[%c15] : memref<36xf32, #tpu.memory_space<smem>>
    %95 = vector.broadcast %94 : f32 to vector<4x6x14xf32>
    %96 = arith.mulf %95, %9 : vector<4x6x14xf32>
    %97 = arith.addf %93, %96 : vector<4x6x14xf32>
    %c16 = arith.constant 16 : index
    %98 = memref.load %arg2[%c16] : memref<36xf32, #tpu.memory_space<smem>>
    %99 = vector.broadcast %98 : f32 to vector<4x6x14xf32>
    %100 = arith.mulf %99, %10 : vector<4x6x14xf32>
    %101 = arith.addf %97, %100 : vector<4x6x14xf32>
    %c17 = arith.constant 17 : index
    %102 = memref.load %arg2[%c17] : memref<36xf32, #tpu.memory_space<smem>>
    %103 = vector.broadcast %102 : f32 to vector<4x6x14xf32>
    %104 = arith.mulf %103, %11 : vector<4x6x14xf32>
    %105 = arith.addf %101, %104 : vector<4x6x14xf32>
    %c1_14 = arith.constant 1 : index
    %106 = memref.load %arg3[%c1_14] : memref<4xf32, #tpu.memory_space<smem>>
    %107 = vector.broadcast %106 : f32 to vector<4x6x14xf32>
    %108 = arith.addf %105, %107 : vector<4x6x14xf32>
    %cst_15 = arith.constant 0.000000e+00 : f32
    %109 = vector.broadcast %cst_15 : f32 to vector<4x6x14xf32>
    %110 = arith.maximumf %108, %109 : vector<4x6x14xf32>
    %111 = vector.extract_strided_slice %110 {offsets = [0, 0, 0], sizes = [4, 6, 13], strides = [1, 1, 1]} : vector<4x6x14xf32> to vector<4x6x13xf32>
    %112 = vector.extract_strided_slice %110 {offsets = [0, 0, 1], sizes = [4, 6, 13], strides = [1, 1, 1]} : vector<4x6x14xf32> to vector<4x6x13xf32>
    %113 = arith.maximumf %111, %112 : vector<4x6x13xf32>
    %114 = vector.extract_strided_slice %113 {offsets = [0, 0, 0], sizes = [4, 5, 13], strides = [1, 1, 1]} : vector<4x6x13xf32> to vector<4x5x13xf32>
    %115 = vector.extract_strided_slice %113 {offsets = [0, 1, 0], sizes = [4, 5, 13], strides = [1, 1, 1]} : vector<4x6x13xf32> to vector<4x5x13xf32>
    %116 = arith.maximumf %114, %115 : vector<4x5x13xf32>
    %117 = vector.extract_strided_slice %116 {offsets = [0, 0, 0], sizes = [4, 1, 13], strides = [1, 1, 1]} : vector<4x5x13xf32> to vector<4x1x13xf32>
    %118 = vector.shape_cast %117 : vector<4x1x13xf32> to vector<4x13xf32>
    %c0_16 = arith.constant 0 : index
    %c39 = arith.constant 39 : index
    %119 = vector.load %arg11[%c0_16, %c39] : memref<4x256xf32, #tpu.memory_space<vmem>>, vector<4x13xf32>
    tpu.vector_store %arg11[%c0_16, %c39], %118 {strides = array<i32>} : memref<4x256xf32, #tpu.memory_space<vmem>>, vector<4x13xf32>,
    %120 = vector.extract_strided_slice %116 {offsets = [0, 2, 0], sizes = [4, 1, 13], strides = [1, 1, 1]} : vector<4x5x13xf32> to vector<4x1x13xf32>
    %121 = vector.shape_cast %120 : vector<4x1x13xf32> to vector<4x13xf32>
    %c0_17 = arith.constant 0 : index
    %c52 = arith.constant 52 : index
    %122 = vector.load %arg11[%c0_17, %c52] : memref<4x256xf32, #tpu.memory_space<vmem>>, vector<4x13xf32>
    tpu.vector_store %arg11[%c0_17, %c52], %121 {strides = array<i32>} : memref<4x256xf32, #tpu.memory_space<vmem>>, vector<4x13xf32>,
    %123 = vector.extract_strided_slice %116 {offsets = [0, 4, 0], sizes = [4, 1, 13], strides = [1, 1, 1]} : vector<4x5x13xf32> to vector<4x1x13xf32>
    %124 = vector.shape_cast %123 : vector<4x1x13xf32> to vector<4x13xf32>
    %c0_18 = arith.constant 0 : index
    %c65 = arith.constant 65 : index
    %125 = vector.load %arg11[%c0_18, %c65] : memref<4x256xf32, #tpu.memory_space<vmem>>, vector<4x13xf32>
    tpu.vector_store %arg11[%c0_18, %c65], %124 {strides = array<i32>} : memref<4x256xf32, #tpu.memory_space<vmem>>, vector<4x13xf32>,
    %cst_19 = arith.constant 0.000000e+00 : f32
    %126 = vector.broadcast %cst_19 : f32 to vector<4x6x14xf32>
    %c18 = arith.constant 18 : index
    %127 = memref.load %arg2[%c18] : memref<36xf32, #tpu.memory_space<smem>>
    %128 = vector.broadcast %127 : f32 to vector<4x6x14xf32>
    %129 = arith.mulf %128, %3 : vector<4x6x14xf32>
    %130 = arith.addf %126, %129 : vector<4x6x14xf32>
    %c19 = arith.constant 19 : index
    %131 = memref.load %arg2[%c19] : memref<36xf32, #tpu.memory_space<smem>>
    %132 = vector.broadcast %131 : f32 to vector<4x6x14xf32>
    %133 = arith.mulf %132, %4 : vector<4x6x14xf32>
    %134 = arith.addf %130, %133 : vector<4x6x14xf32>
    %c20 = arith.constant 20 : index
    %135 = memref.load %arg2[%c20] : memref<36xf32, #tpu.memory_space<smem>>
    %136 = vector.broadcast %135 : f32 to vector<4x6x14xf32>
    %137 = arith.mulf %136, %5 : vector<4x6x14xf32>
    %138 = arith.addf %134, %137 : vector<4x6x14xf32>
    %c21 = arith.constant 21 : index
    %139 = memref.load %arg2[%c21] : memref<36xf32, #tpu.memory_space<smem>>
    %140 = vector.broadcast %139 : f32 to vector<4x6x14xf32>
    %141 = arith.mulf %140, %6 : vector<4x6x14xf32>
    %142 = arith.addf %138, %141 : vector<4x6x14xf32>
    %c22 = arith.constant 22 : index
    %143 = memref.load %arg2[%c22] : memref<36xf32, #tpu.memory_space<smem>>
    %144 = vector.broadcast %143 : f32 to vector<4x6x14xf32>
    %145 = arith.mulf %144, %7 : vector<4x6x14xf32>
    %146 = arith.addf %142, %145 : vector<4x6x14xf32>
    %c23 = arith.constant 23 : index
    %147 = memref.load %arg2[%c23] : memref<36xf32, #tpu.memory_space<smem>>
    %148 = vector.broadcast %147 : f32 to vector<4x6x14xf32>
    %149 = arith.mulf %148, %8 : vector<4x6x14xf32>
    %150 = arith.addf %146, %149 : vector<4x6x14xf32>
    %c24 = arith.constant 24 : index
    %151 = memref.load %arg2[%c24] : memref<36xf32, #tpu.memory_space<smem>>
    %152 = vector.broadcast %151 : f32 to vector<4x6x14xf32>
    %153 = arith.mulf %152, %9 : vector<4x6x14xf32>
    %154 = arith.addf %150, %153 : vector<4x6x14xf32>
    %c25 = arith.constant 25 : index
    %155 = memref.load %arg2[%c25] : memref<36xf32, #tpu.memory_space<smem>>
    %156 = vector.broadcast %155 : f32 to vector<4x6x14xf32>
    %157 = arith.mulf %156, %10 : vector<4x6x14xf32>
    %158 = arith.addf %154, %157 : vector<4x6x14xf32>
    %c26_20 = arith.constant 26 : index
    %159 = memref.load %arg2[%c26_20] : memref<36xf32, #tpu.memory_space<smem>>
    %160 = vector.broadcast %159 : f32 to vector<4x6x14xf32>
    %161 = arith.mulf %160, %11 : vector<4x6x14xf32>
    %162 = arith.addf %158, %161 : vector<4x6x14xf32>
    %c2_21 = arith.constant 2 : index
    %163 = memref.load %arg3[%c2_21] : memref<4xf32, #tpu.memory_space<smem>>
    %164 = vector.broadcast %163 : f32 to vector<4x6x14xf32>
    %165 = arith.addf %162, %164 : vector<4x6x14xf32>
    %cst_22 = arith.constant 0.000000e+00 : f32
    %166 = vector.broadcast %cst_22 : f32 to vector<4x6x14xf32>
    %167 = arith.maximumf %165, %166 : vector<4x6x14xf32>
    %168 = vector.extract_strided_slice %167 {offsets = [0, 0, 0], sizes = [4, 6, 13], strides = [1, 1, 1]} : vector<4x6x14xf32> to vector<4x6x13xf32>
    %169 = vector.extract_strided_slice %167 {offsets = [0, 0, 1], sizes = [4, 6, 13], strides = [1, 1, 1]} : vector<4x6x14xf32> to vector<4x6x13xf32>
    %170 = arith.maximumf %168, %169 : vector<4x6x13xf32>
    %171 = vector.extract_strided_slice %170 {offsets = [0, 0, 0], sizes = [4, 5, 13], strides = [1, 1, 1]} : vector<4x6x13xf32> to vector<4x5x13xf32>
    %172 = vector.extract_strided_slice %170 {offsets = [0, 1, 0], sizes = [4, 5, 13], strides = [1, 1, 1]} : vector<4x6x13xf32> to vector<4x5x13xf32>
    %173 = arith.maximumf %171, %172 : vector<4x5x13xf32>
    %174 = vector.extract_strided_slice %173 {offsets = [0, 0, 0], sizes = [4, 1, 13], strides = [1, 1, 1]} : vector<4x5x13xf32> to vector<4x1x13xf32>
    %175 = vector.shape_cast %174 : vector<4x1x13xf32> to vector<4x13xf32>
    %c0_23 = arith.constant 0 : index
    %c78 = arith.constant 78 : index
    %176 = vector.load %arg11[%c0_23, %c78] : memref<4x256xf32, #tpu.memory_space<vmem>>, vector<4x13xf32>
    tpu.vector_store %arg11[%c0_23, %c78], %175 {strides = array<i32>} : memref<4x256xf32, #tpu.memory_space<vmem>>, vector<4x13xf32>,
    %177 = vector.extract_strided_slice %173 {offsets = [0, 2, 0], sizes = [4, 1, 13], strides = [1, 1, 1]} : vector<4x5x13xf32> to vector<4x1x13xf32>
    %178 = vector.shape_cast %177 : vector<4x1x13xf32> to vector<4x13xf32>
    %c0_24 = arith.constant 0 : index
    %c91 = arith.constant 91 : index
    %179 = vector.load %arg11[%c0_24, %c91] : memref<4x256xf32, #tpu.memory_space<vmem>>, vector<4x13xf32>
    tpu.vector_store %arg11[%c0_24, %c91], %178 {strides = array<i32>} : memref<4x256xf32, #tpu.memory_space<vmem>>, vector<4x13xf32>,
    %180 = vector.extract_strided_slice %173 {offsets = [0, 4, 0], sizes = [4, 1, 13], strides = [1, 1, 1]} : vector<4x5x13xf32> to vector<4x1x13xf32>
    %181 = vector.shape_cast %180 : vector<4x1x13xf32> to vector<4x13xf32>
    %c0_25 = arith.constant 0 : index
    %c104 = arith.constant 104 : index
    %182 = vector.load %arg11[%c0_25, %c104] : memref<4x256xf32, #tpu.memory_space<vmem>>, vector<4x13xf32>
    tpu.vector_store %arg11[%c0_25, %c104], %181 {strides = array<i32>} : memref<4x256xf32, #tpu.memory_space<vmem>>, vector<4x13xf32>,
    %cst_26 = arith.constant 0.000000e+00 : f32
    %183 = vector.broadcast %cst_26 : f32 to vector<4x6x14xf32>
    %c27 = arith.constant 27 : index
    %184 = memref.load %arg2[%c27] : memref<36xf32, #tpu.memory_space<smem>>
    %185 = vector.broadcast %184 : f32 to vector<4x6x14xf32>
    %186 = arith.mulf %185, %3 : vector<4x6x14xf32>
    %187 = arith.addf %183, %186 : vector<4x6x14xf32>
    %c28 = arith.constant 28 : index
    %188 = memref.load %arg2[%c28] : memref<36xf32, #tpu.memory_space<smem>>
    %189 = vector.broadcast %188 : f32 to vector<4x6x14xf32>
    %190 = arith.mulf %189, %4 : vector<4x6x14xf32>
    %191 = arith.addf %187, %190 : vector<4x6x14xf32>
    %c29 = arith.constant 29 : index
    %192 = memref.load %arg2[%c29] : memref<36xf32, #tpu.memory_space<smem>>
    %193 = vector.broadcast %192 : f32 to vector<4x6x14xf32>
    %194 = arith.mulf %193, %5 : vector<4x6x14xf32>
    %195 = arith.addf %191, %194 : vector<4x6x14xf32>
    %c30 = arith.constant 30 : index
    %196 = memref.load %arg2[%c30] : memref<36xf32, #tpu.memory_space<smem>>
    %197 = vector.broadcast %196 : f32 to vector<4x6x14xf32>
    %198 = arith.mulf %197, %6 : vector<4x6x14xf32>
    %199 = arith.addf %195, %198 : vector<4x6x14xf32>
    %c31 = arith.constant 31 : index
    %200 = memref.load %arg2[%c31] : memref<36xf32, #tpu.memory_space<smem>>
    %201 = vector.broadcast %200 : f32 to vector<4x6x14xf32>
    %202 = arith.mulf %201, %7 : vector<4x6x14xf32>
    %203 = arith.addf %199, %202 : vector<4x6x14xf32>
    %c32 = arith.constant 32 : index
    %204 = memref.load %arg2[%c32] : memref<36xf32, #tpu.memory_space<smem>>
    %205 = vector.broadcast %204 : f32 to vector<4x6x14xf32>
    %206 = arith.mulf %205, %8 : vector<4x6x14xf32>
    %207 = arith.addf %203, %206 : vector<4x6x14xf32>
    %c33 = arith.constant 33 : index
    %208 = memref.load %arg2[%c33] : memref<36xf32, #tpu.memory_space<smem>>
    %209 = vector.broadcast %208 : f32 to vector<4x6x14xf32>
    %210 = arith.mulf %209, %9 : vector<4x6x14xf32>
    %211 = arith.addf %207, %210 : vector<4x6x14xf32>
    %c34 = arith.constant 34 : index
    %212 = memref.load %arg2[%c34] : memref<36xf32, #tpu.memory_space<smem>>
    %213 = vector.broadcast %212 : f32 to vector<4x6x14xf32>
    %214 = arith.mulf %213, %10 : vector<4x6x14xf32>
    %215 = arith.addf %211, %214 : vector<4x6x14xf32>
    %c35 = arith.constant 35 : index
    %216 = memref.load %arg2[%c35] : memref<36xf32, #tpu.memory_space<smem>>
    %217 = vector.broadcast %216 : f32 to vector<4x6x14xf32>
    %218 = arith.mulf %217, %11 : vector<4x6x14xf32>
    %219 = arith.addf %215, %218 : vector<4x6x14xf32>
    %c3_27 = arith.constant 3 : index
    %220 = memref.load %arg3[%c3_27] : memref<4xf32, #tpu.memory_space<smem>>
    %221 = vector.broadcast %220 : f32 to vector<4x6x14xf32>
    %222 = arith.addf %219, %221 : vector<4x6x14xf32>
    %cst_28 = arith.constant 0.000000e+00 : f32
    %223 = vector.broadcast %cst_28 : f32 to vector<4x6x14xf32>
    %224 = arith.maximumf %222, %223 : vector<4x6x14xf32>
    %225 = vector.extract_strided_slice %224 {offsets = [0, 0, 0], sizes = [4, 6, 13], strides = [1, 1, 1]} : vector<4x6x14xf32> to vector<4x6x13xf32>
    %226 = vector.extract_strided_slice %224 {offsets = [0, 0, 1], sizes = [4, 6, 13], strides = [1, 1, 1]} : vector<4x6x14xf32> to vector<4x6x13xf32>
    %227 = arith.maximumf %225, %226 : vector<4x6x13xf32>
    %228 = vector.extract_strided_slice %227 {offsets = [0, 0, 0], sizes = [4, 5, 13], strides = [1, 1, 1]} : vector<4x6x13xf32> to vector<4x5x13xf32>
    %229 = vector.extract_strided_slice %227 {offsets = [0, 1, 0], sizes = [4, 5, 13], strides = [1, 1, 1]} : vector<4x6x13xf32> to vector<4x5x13xf32>
    %230 = arith.maximumf %228, %229 : vector<4x5x13xf32>
    %231 = vector.extract_strided_slice %230 {offsets = [0, 0, 0], sizes = [4, 1, 13], strides = [1, 1, 1]} : vector<4x5x13xf32> to vector<4x1x13xf32>
    %232 = vector.shape_cast %231 : vector<4x1x13xf32> to vector<4x13xf32>
    %c0_29 = arith.constant 0 : index
    %c117 = arith.constant 117 : index
    %233 = vector.load %arg11[%c0_29, %c117] : memref<4x256xf32, #tpu.memory_space<vmem>>, vector<4x13xf32>
    tpu.vector_store %arg11[%c0_29, %c117], %232 {strides = array<i32>} : memref<4x256xf32, #tpu.memory_space<vmem>>, vector<4x13xf32>,
    %234 = vector.extract_strided_slice %230 {offsets = [0, 2, 0], sizes = [4, 1, 13], strides = [1, 1, 1]} : vector<4x5x13xf32> to vector<4x1x13xf32>
    %235 = vector.shape_cast %234 : vector<4x1x13xf32> to vector<4x13xf32>
    %c0_30 = arith.constant 0 : index
    %c130 = arith.constant 130 : index
    %236 = vector.load %arg11[%c0_30, %c130] : memref<4x256xf32, #tpu.memory_space<vmem>>, vector<4x13xf32>
    tpu.vector_store %arg11[%c0_30, %c130], %235 {strides = array<i32>} : memref<4x256xf32, #tpu.memory_space<vmem>>, vector<4x13xf32>,
    %237 = vector.extract_strided_slice %230 {offsets = [0, 4, 0], sizes = [4, 1, 13], strides = [1, 1, 1]} : vector<4x5x13xf32> to vector<4x1x13xf32>
    %238 = vector.shape_cast %237 : vector<4x1x13xf32> to vector<4x13xf32>
    %c0_31 = arith.constant 0 : index
    %c143 = arith.constant 143 : index
    %239 = vector.load %arg11[%c0_31, %c143] : memref<4x256xf32, #tpu.memory_space<vmem>>, vector<4x13xf32>
    tpu.vector_store %arg11[%c0_31, %c143], %238 {strides = array<i32>} : memref<4x256xf32, #tpu.memory_space<vmem>>, vector<4x13xf32>,
    %c0_32 = arith.constant 0 : index
    %c0_33 = arith.constant 0 : index
    %240 = vector.load %arg11[%c0_32, %c0_33] : memref<4x256xf32, #tpu.memory_space<vmem>>, vector<4x256xf32>
    %241 = arith.truncf %240 : vector<4x256xf32> to vector<4x256xbf16>
    %c0_34 = arith.constant 0 : index
    %c0_35 = arith.constant 0 : index
    %242 = vector.load %arg4[%c0_34, %c0_35] : memref<256x128xbf16, #tpu.memory_space<vmem>>, vector<256x128xbf16>
    %cst_36 = arith.constant dense<0.000000e+00> : vector<4x128xf32>
    %243 = tpu.matmul %241, %242, %cst_36 {dimension_numbers = #tpu.dot_dimension_numbers<[1], [0], [0], [1], [0, 0, 1, 1], [], []>} : vector<4x256xbf16>, vector<256x128xbf16>, vector<4x128xf32> -> vector<4x128xf32>
    %c0_37 = arith.constant 0 : index
    %c0_38 = arith.constant 0 : index
    %244 = vector.load %arg5[%c0_37, %c0_38] : memref<1x128xf32, #tpu.memory_space<vmem>>, vector<1x128xf32>
    %245 = vector.broadcast %244 : vector<1x128xf32> to vector<4x128xf32>
    %246 = arith.addf %243, %245 : vector<4x128xf32>
    %cst_39 = arith.constant 0.000000e+00 : f32
    %247 = vector.broadcast %cst_39 : f32 to vector<4x128xf32>
    %248 = arith.maximumf %246, %247 : vector<4x128xf32>
    %249 = arith.truncf %248 : vector<4x128xf32> to vector<4x128xbf16>
    %c0_40 = arith.constant 0 : index
    %c0_41 = arith.constant 0 : index
    %250 = vector.load %arg6[%c0_40, %c0_41] : memref<128x128xbf16, #tpu.memory_space<vmem>>, vector<128x128xbf16>
    %cst_42 = arith.constant dense<0.000000e+00> : vector<4x128xf32>
    %251 = tpu.matmul %249, %250, %cst_42 {dimension_numbers = #tpu.dot_dimension_numbers<[1], [0], [0], [1], [0, 0, 1, 1], [], []>} : vector<4x128xbf16>, vector<128x128xbf16>, vector<4x128xf32> -> vector<4x128xf32>
    %c0_43 = arith.constant 0 : index
    %c0_44 = arith.constant 0 : index
    %252 = vector.load %arg7[%c0_43, %c0_44] : memref<1x128xf32, #tpu.memory_space<vmem>>, vector<1x128xf32>
    %253 = vector.broadcast %252 : vector<1x128xf32> to vector<4x128xf32>
    %254 = arith.addf %251, %253 : vector<4x128xf32>
    %cst_45 = arith.constant 0.000000e+00 : f32
    %255 = vector.broadcast %cst_45 : f32 to vector<4x128xf32>
    %256 = arith.maximumf %254, %255 : vector<4x128xf32>
    %257 = arith.truncf %256 : vector<4x128xf32> to vector<4x128xbf16>
    %c0_46 = arith.constant 0 : index
    %c0_47 = arith.constant 0 : index
    %258 = vector.load %arg8[%c0_46, %c0_47] : memref<128x128xbf16, #tpu.memory_space<vmem>>, vector<128x128xbf16>
    %cst_48 = arith.constant dense<0.000000e+00> : vector<4x128xf32>
    %259 = tpu.matmul %257, %258, %cst_48 {dimension_numbers = #tpu.dot_dimension_numbers<[1], [0], [0], [1], [0, 0, 1, 1], [], []>} : vector<4x128xbf16>, vector<128x128xbf16>, vector<4x128xf32> -> vector<4x128xf32>
    %c0_49 = arith.constant 0 : index
    %c0_50 = arith.constant 0 : index
    %260 = vector.load %arg9[%c0_49, %c0_50] : memref<1x128xf32, #tpu.memory_space<vmem>>, vector<1x128xf32>
    %261 = vector.broadcast %260 : vector<1x128xf32> to vector<4x128xf32>
    %262 = arith.addf %259, %261 : vector<4x128xf32>
    %c0_51 = arith.constant 0 : index
    %c0_52 = arith.constant 0 : index
    %263 = vector.load %arg10[%c0_51, %c0_52] : memref<4x128xf32, #tpu.memory_space<vmem>>, vector<4x128xf32>
    tpu.vector_store %arg10[%c0_51, %c0_52], %262 {strides = array<i32>} : memref<4x128xf32, #tpu.memory_space<vmem>>, vector<4x128xf32>,
    return
  }
  func.func @transform_0(%arg0: i32) -> (i32, i32, i32) {
    %c0_i32 = arith.constant 0 : i32
    %c0_i32_0 = arith.constant 0 : i32
    %c0_i32_1 = arith.constant 0 : i32
    return %arg0, %c0_i32, %c0_i32_0 : i32, i32, i32
  }
  func.func @transform_1(%arg0: i32) -> i32 {
    %c0_i32 = arith.constant 0 : i32
    %c0_i32_0 = arith.constant 0 : i32
    return %c0_i32 : i32
  }
  func.func @transform_2(%arg0: i32) -> i32 {
    %c0_i32 = arith.constant 0 : i32
    %c0_i32_0 = arith.constant 0 : i32
    return %c0_i32 : i32
  }
  func.func @transform_3(%arg0: i32) -> (i32, i32) {
    %c0_i32 = arith.constant 0 : i32
    %c0_i32_0 = arith.constant 0 : i32
    %c0_i32_1 = arith.constant 0 : i32
    return %c0_i32, %c0_i32_0 : i32, i32
  }
  func.func @transform_4(%arg0: i32) -> (i32, i32) {
    %c0_i32 = arith.constant 0 : i32
    %c0_i32_0 = arith.constant 0 : i32
    %c0_i32_1 = arith.constant 0 : i32
    return %c0_i32, %c0_i32_0 : i32, i32
  }
  func.func @transform_5(%arg0: i32) -> (i32, i32) {
    %c0_i32 = arith.constant 0 : i32
    %c0_i32_0 = arith.constant 0 : i32
    %c0_i32_1 = arith.constant 0 : i32
    return %c0_i32, %c0_i32_0 : i32, i32
  }
  func.func @transform_6(%arg0: i32) -> (i32, i32) {
    %c0_i32 = arith.constant 0 : i32
    %c0_i32_0 = arith.constant 0 : i32
    %c0_i32_1 = arith.constant 0 : i32
    return %c0_i32, %c0_i32_0 : i32, i32
  }
  func.func @transform_7(%arg0: i32) -> (i32, i32) {
    %c0_i32 = arith.constant 0 : i32
    %c0_i32_0 = arith.constant 0 : i32
    %c0_i32_1 = arith.constant 0 : i32
    return %c0_i32, %c0_i32_0 : i32, i32
  }
  func.func @transform_8(%arg0: i32) -> (i32, i32) {
    %c0_i32 = arith.constant 0 : i32
    %c0_i32_0 = arith.constant 0 : i32
    %c0_i32_1 = arith.constant 0 : i32
    return %c0_i32, %c0_i32_0 : i32, i32
  }
  func.func @transform_9(%arg0: i32) -> (i32, i32) {
    %c0_i32 = arith.constant 0 : i32
    %c0_i32_0 = arith.constant 0 : i32
    return %arg0, %c0_i32 : i32, i32
  }
}

</mosaic_0001>

<bundles_post_ra>
// kernel: popphy_cnn_forward.1
= control target key start
LH: loop header
LB: loop body
LE: loop exit
PB: predicated region body
PF: predicated region fallthrough
CT: control target
= control target key end

     0   :  { %14 = vsyncpa [#allocation4], 0  ;;  %s2967_s0 = inlined_call_operand.hbm [shape: f32[4,8,16], index: 0, kind: input, shape index: {}]   ;;  %s2968_s1 = inlined_call_operand.vmem [shape: f32[36], index: 1, kind: input, shape index: {}]   ;;  %s2969_s2 = inlined_call_operand.hbm [shape: f32[4], index: 2, kind: input, shape index: {}]   ;;  %s2970_s3 = inlined_call_operand.hbm [shape: bf16[256,128], index: 3, kind: input, shape index: {}]   ;;  %s2971_s4 = inlined_call_operand.vmem [shape: f32[1,128], index: 4, kind: input, shape index: {}]   ;;  %s2972_s5 = inlined_call_operand.hbm [shape: bf16[128,128], index: 5, kind: input, shape index: {}]   ;;  %s2973_s6 = inlined_call_operand.vmem [shape: f32[1,128], index: 6, kind: input, shape index: {}]   ;;  %s2974_s7 = inlined_call_operand.hbm [shape: bf16[128,128], index: 7, kind: input, shape index: {}]   ;;  %s2975_s8 = inlined_call_operand.vmem [shape: f32[1,128], index: 8, kind: input, shape index: {}]   ;;  %s2976_s9 = inlined_call_operand.hbm [shape: f32[4,128], index: 9, kind: output, shape index: {}]  }
   0x1   :  { %15 = vsyncpa [#allocation7], 0 }
   0x2   :  { %16 = vsyncpa [#allocation6], 0 }
   0x3   :  { %17 = vsyncpa [#allocation11], 0 }
   0x4   :  { %18 = vsyncpa [#allocation14], 0  ;;  %s55_s11 = sshll.u32 %s2970_s3, 4  ;;  %s56_s11 = int_to_ptr.hbm [resolvable:$true] %s55_s11 }
   0x5   :  { %19 = vsyncpa [#allocation5], 0  ;;  %s2196_s12 = smov [#allocation10]   ;;  %s24_s16 = sshll.u32 %s2967_s0, 4  ;;  %s25_s16 = int_to_ptr.hbm [resolvable:$true] %s24_s16 }
   0x6   :  { %s57_s13 = sshll.u32 %s2196_s12, 4  ;;  %s2197_s17 = smov 64   ;;  %s58_s13 = int_to_ptr.vmem [resolvable:$true] %s57_s13 }
   0x7   :  { %s2198_s18 = smov 4   ;;  %s2199_s19 = smov [#allocation3]  }
   0x8   :  { %63 = dma.hbm_to_vmem [thread:$0]  %s56_s11, 2048, %s58_s13, [#allocation11], %s2197_s17, %s2197_s17, %s2198_s18  }
   0x9   :  { %s26_s20 = sshll.u32 %s2199_s19, 4  ;;  %s2200_s3 = smov 128   ;;  %s27_s20 = int_to_ptr.vmem [resolvable:$true] %s26_s20 }
   0xa   :  { %s2201_s21 = smov 8   ;;  %s38_s24 = sshll.u32 %s2968_s1, 4  ;;  %s39_s24 = int_to_ptr.vmem [resolvable:$true] %s38_s24 }
   0xb   :  { %32 = dma.hbm_to_vmem [thread:$0]  %s25_s16, 512, %s27_s20, [#allocation4], %s2200_s3, %s2200_s3, %s2201_s21  }
   0xc   :  { %s47_s26 = sshll.u32 %s2969_s2, 4  ;;  %s2202_s27 = smov [#allocation8]   ;;  %s48_s26 = int_to_ptr.hbm [resolvable:$true] %s47_s26 }
   0xd   :  { %41 = dma.vmem_to_smem %s39_s24, 16, %s2202_s27, [#allocation7]  }
   0xe   :  { %s2203_s28 = smov [#allocation9]   ;;  %s70_s10 = sshll.u32 %s2972_s5, 4  ;;  %s71_s10 = int_to_ptr.hbm [resolvable:$true] %s70_s10 }
   0xf   :  { %50 = dma.hbm_to_smem %s48_s26, 16, %s2203_s28, [#allocation6]  }
  0x10   :  { %s2204_s11 = smov [#allocation12]   ;;  %s85_s14 = sshll.u32 %s2974_s7, 4  ;;  %s86_s14 = int_to_ptr.hbm [resolvable:$true] %s85_s14 }
  0x11   :  { %s72_s12 = sshll.u32 %s2204_s11, 4  ;;  %s2205_s2 = smov [#allocation13]   ;;  %s73_s12 = int_to_ptr.vmem [resolvable:$true] %s72_s12 }
  0x12   :  { %78 = dma.hbm_to_vmem [thread:$0]  %s71_s10, 1024, %s73_s12, [#allocation11], %s2197_s17, %s2197_s17, %s2198_s18  }
  0x13   :  { %s87_s15 = sshll.u32 %s2205_s2, 4  ;;  %s88_s15 = int_to_ptr.vmem [resolvable:$true] %s87_s15 }
  0x14   :  { %93 = dma.hbm_to_vmem [thread:$0]  %s86_s14, 1024, %s88_s15, [#allocation14], %s2197_s17, %s2197_s17, %s2198_s18  }
  0x15   :  { %2184 = dma.done.wait [#allocation4], 512  }
  0x16   :  { %2185 = vsyncadd [#allocation4], 4294966784 }
  0x17   :  { %2186 = dma.done.wait [#allocation7], 16  }
  0x18   :  { %2187 = vsyncadd [#allocation7], 4294967280 }
  0x19   :  { %2188 = dma.done.wait [#allocation6], 16  }
  0x1a   :  { %2189 = vsyncadd [#allocation6], 4294967280 }
  0x1b   :  { %2190 = dma.done.wait [#allocation11], 3072  }
  0x1c   :  { %2191 = vsyncadd [#allocation11], 4294964224 }
  0x1d   :  { %2192 = dma.done.wait [#allocation14], 1024  }
  0x1e   :  { %2193 = vsyncadd [#allocation14], 4294966272 }
  0x1f   :  { %120 = sfence }
  0x20   :  { %s1810_s5 = sld [smem:[#allocation8 + $0x1]]  ;;  %v2298_v0 = vld [vmem:[#allocation3 + $0x18] sm:$0xff]  ;;  %v2300_v1 = vld [vmem:[#allocation3 + $0x10] sm:$0xff]  ;;  %v2302_v2 = vld [vmem:[#allocation3 + $0x8] sm:$0xff]  ;;  %s2206_s17 = smov 127   ;;  %vm403_vm0 = vcmask 1041409  }
  0x21   :  { %s1811_s7 = sld [smem:[#allocation8 + $0x2]]  ;;  %v2310_v8 = vld [vmem:[#allocation3] sm:$0xff]  ;;  %s2207_s19 = smov 126   ;;  %vm405_vm1 = vcmask 1045509   ;;  %vm408_vm2 = vcmask 1042434   ;;  %vm410_vm3 = vcmask 1046534  }
  0x22   :  { %s1813_s16 = sld [smem:[#allocation8 + $0x4]]  ;;  %vm413_vm4 = vcmask 1043459   ;;  %vm415_vm5 = vcmask 1047559   ;;  %vm418_vm6 = vcmask 101376   ;;  %vm432_vm7 = vcmask 207976  }
  0x23   :  { %s1814_s18 = sld [smem:[#allocation8 + $0x5]]  ;;  %vm458_vm8 = vcmask 314576   ;;  %vm748_vm9 = vcmask 421176   ;;  %vm762_vm10 = vcmask 527776   ;;  %vm788_vm11 = vcmask 634376  }
  0x24   :  { %s1819_s20 = sld [smem:[#allocation8 + $0xa]]  ;;  %vm1078_vm12 = vcmask 740976   ;;  %vm1092_vm13 = vcmask 847576   ;;  %vm1118_vm14 = vcmask 954176   ;;  %vm1411_vm15 = vcmask 1044392  }
  0x25   :  { %s1816_s3 = sld [smem:[#allocation8 + $0x7]] }
  0x26   :  { %v137_v3 = vstv %s1810_s5  ;;  %s1820_s21 = sld [smem:[#allocation8 + $0xb]] }
  0x27   :  { %v141_v4 = vmul.f32 %v137_v3, %v2298_v0  ;;  %v140_v5 = vmul.f32 %v137_v3, %v2300_v1  ;;  %v139_v6 = vmul.f32 %v137_v3, %v2302_v2  ;;  %v163_v7 = vstv %s1811_s7  ;;  %s1817_s22 = sld [smem:[#allocation8 + $0x8]] }
  0x28   :  { %v165_v9 = vmul.f32 %v163_v7, %v2302_v2  ;;  %v164_v10 = vmul.f32 %v163_v7, %v2310_v8  ;;  %v138_v11 = vmul.f32 %v137_v3, %v2310_v8  ;;  %v211_v12 = vstv %s1813_s16  ;;  %s1822_s23 = sld [smem:[#allocation8 + $0xd]] }
  0x29   :  { %152 = vrot.lane.b32.xlu2 %v141_v4, %s2206_s17  ;;  %150 = vrot.lane.b32.xlu1 %v140_v5, %s2206_s17  ;;  %v213_v13 = vmul.f32 %v211_v12, %v2302_v2  ;;  %v167_v14 = vmul.f32 %v163_v7, %v2298_v0  ;;  %v166_v16 = vmul.f32 %v163_v7, %v2300_v1  ;;  %v241_v17 = vstv %s1814_s18  ;;  %s1823_s24 = sld [smem:[#allocation8 + $0xe]] }
  0x2a   :  { %148 = vrot.lane.b32.xlu0 %v139_v6, %s2206_s17  ;;  %v214_v18 = vmul.f32 %v211_v12, %v2300_v1  ;;  %v243_v19 = vmul.f32 %v241_v17, %v2302_v2  ;;  %v212_v20 = vmul.f32 %v211_v12, %v2310_v8  ;;  %v215_v24 = vmul.f32 %v211_v12, %v2298_v0  ;;  %s1829_s25 = sld [smem:[#allocation8 + $0x13]] }
  0x2b   :  { %v221_v15 = vrot.slane %v213_v13, 1  ;;  %v242_v25 = vmul.f32 %v241_v17, %v2310_v8  ;;  %v471_v26 = vstv %s1819_s20  ;;  %v244_v30 = vmul.f32 %v241_v17, %v2300_v1  ;;  %s1825_s0 = sld [smem:[#allocation8 + $0x10]] }
  0x2c   :  { %v222_v21 = vrot.slane %v214_v18, 1  ;;  %v251_v22 = vrot.slane %v243_v19, 1  ;;  %v220_v23 = vrot.slane %v212_v20, 1  ;;  %v223_v27 = vrot.slane %v215_v24, 1  ;;  %s1830_s26 = sld [smem:[#allocation8 + $0x14]] }
  0x2d   :  { %v250_v28 = vrot.slane %v242_v25, 1  ;;  %v473_v29 = vmul.f32 %v471_v26, %v2302_v2  ;;  %v472_v31 = vmul.f32 %v471_v26, %v2310_v8  ;;  %v474_v32 = vmul.f32 %v471_v26, %v2300_v1  ;;  %s126_s27 = sld [smem:[#allocation8]] }
  0x2e   :  { %v252_v33 = vrot.slane %v244_v30, 1  ;;  %v293_v34 = vstv %s1816_s3  ;;  %v245_v35 = vmul.f32 %v241_v17, %v2298_v0  ;;  %v497_v37 = vstv %s1820_s21  ;;  %s1812_s28 = sld [smem:[#allocation8 + $0x3]] }
  0x2f   :  { %v295_v36 = vmul.f32 %v293_v34, %v2302_v2  ;;  %v499_v40 = vmul.f32 %v497_v37, %v2302_v2  ;;  %v498_v41 = vmul.f32 %v497_v37, %v2310_v8  ;;  %v500_v42 = vmul.f32 %v497_v37, %v2300_v1  ;;  %s1826_s29 = sld [smem:[#allocation8 + $0x11]] }
  0x30   :  { %v253_v38 = vrot.slane %v245_v35, 1  ;;  %v475_v43 = vmul.f32 %v471_v26, %v2298_v0  ;;  %v323_v44 = vstv %s1817_s22  ;;  %v296_v45 = vmul.f32 %v293_v34, %v2300_v1  ;;  %s1832_s30 = sld [smem:[#allocation8 + $0x16]] }
  0x31   :  { %174 = vrot.lane.b32.xlu1 %v165_v9, %s2207_s19  ;;  %172 = vrot.lane.b32.xlu2 %v164_v10, %s2207_s19  ;;  %v303_v39 = vrot.slane %v295_v36, 2  ;;  %v325_v46 = vmul.f32 %v323_v44, %v2302_v2  ;;  %v294_v47 = vmul.f32 %v293_v34, %v2310_v8  ;;  %v545_v51 = vstv %s1822_s23  ;;  %s1815_s10 = sld [smem:[#allocation8 + $0x6]] }
  0x32   :  { %146 = vrot.lane.b32.xlu0 %v138_v11, %s2206_s17  ;;  %v304_v48 = vrot.slane %v296_v45, 2  ;;  %v547_v52 = vmul.f32 %v545_v51, %v2302_v2  ;;  %v297_v53 = vmul.f32 %v293_v34, %v2298_v0  ;;  %v501_v56 = vmul.f32 %v497_v37, %v2298_v0  ;;  %s1818_s11 = sld [smem:[#allocation8 + $0x9]] }
  0x33   :  { %v333_v49 = vrot.slane %v325_v46, 2  ;;  %v302_v50 = vrot.slane %v294_v47, 2  ;;  %v326_v57 = vmul.f32 %v323_v44, %v2300_v1  ;;  %v546_v58 = vmul.f32 %v545_v51, %v2310_v8  ;;  %s1833_s12 = sld [smem:[#allocation8 + $0x17]] }
  0x34   :  { %v555_v54 = vrot.slane %v547_v52, 1  ;;  %v305_v55 = vrot.slane %v297_v53, 2  ;;  %v324_v59 = vmul.f32 %v323_v44, %v2310_v8  ;;  %v575_v63 = vstv %s1823_s24  ;;  %s1839_s13 = sld [smem:[#allocation8 + $0x1c]] }
  0x35   :  { %v334_v60 = vrot.slane %v326_v57, 2  ;;  %v554_v61 = vrot.slane %v546_v58, 1  ;;  %v577_v3 = vmul.f32 %v575_v63, %v2302_v2  ;;  %v801_v4 = vstv %s1829_s25  ;;  %s1821_s1 = sld [smem:[#allocation8 + $0xc]] }
  0x36   :  { %v332_v62 = vrot.slane %v324_v59, 2  ;;  %v548_v5 = vmul.f32 %v545_v51, %v2300_v1  ;;  %v803_v7 = vmul.f32 %v801_v4, %v2302_v2  ;;  %v549_v10 = vmul.f32 %v545_v51, %v2298_v0  ;;  %s1835_s14 = sld [smem:[#allocation8 + $0x19]] }
  0x37   :  { %v585_v6 = vrot.slane %v577_v3, 1  ;;  %v576_v11 = vmul.f32 %v575_v63, %v2310_v8  ;;  %v327_v12 = vmul.f32 %v323_v44, %v2298_v0  ;;  %v578_v17 = vmul.f32 %v575_v63, %v2300_v1  ;;  %s1840_s2 = sld [smem:[#allocation8 + $0x1d]] }
  0x38   :  { %v556_v9 = vrot.slane %v548_v5, 1  ;;  %v802_v19 = vmul.f32 %v801_v4, %v2310_v8  ;;  %v804_v20 = vmul.f32 %v801_v4, %v2300_v1  ;;  %v2394_v26 = vstv %s1830_s26  ;;  %s1836_s15 = sld [smem:[#allocation8 + $0x1a]] }
  0x39   :  { %178 = vrot.lane.b32.xlu1 %v167_v14, %s2207_s19  ;;  %226 = vrot.lane.b32.xlu2 %v221_v15, %s2206_s17  ;;  %v557_v14 = vrot.slane %v549_v10, 1  ;;  %v584_v15 = vrot.slane %v576_v11, 1  ;;  %v127_v30 = vstv %s126_s27  ;;  %v828_v35 = vmul.f32 %v2394_v26, %v2310_v8  ;;  %s1842_s5 = sld [smem:[#allocation8 + $0x1f]] }
  0x3a   :  { %176 = vrot.lane.b32.xlu0 %v166_v16, %s2207_s19  ;;  %v335_v16 = vrot.slane %v327_v12, 2  ;;  %v830_v36 = vmul.f32 %v2394_v26, %v2300_v1  ;;  %v129_v37 = vmul.f32 %v127_v30, %v2302_v2  ;;  %v2422_v57 = vstv %s1832_s30  ;;  %s1828_s7 = sld [smem:[#allocation8 + $0x12]]  ;;  %s2212_s30 = smov 39  }
  0x3b   :  { %v130_v58 = vmul.f32 %v127_v30, %v2300_v1  ;;  %s1843_s16 = sld [smem:[#allocation8 + $0x20]] }
  0x3c   :  { %s1845_s18 = sld [smem:[#allocation8 + $0x22]] }
  0x3d   :  { %s1831_s20 = sld [smem:[#allocation8 + $0x15]] }
  0x3e   :  { %s1846_s3 = sld [smem:[#allocation8 + $0x23]] }
  0x3f   :  { %s1824_s21 = sld [smem:[#allocation8 + $0xf]] }
  0x40   :  { %s352_s22 = sld [smem:[#allocation9]] }
  0x41   :  { %228 = vrot.lane.b32.xlu1 %v222_v21, %s2206_s17  ;;  %256 = vrot.lane.b32.xlu2 %v251_v22, %s2207_s19  ;;  %v586_v21 = vrot.slane %v578_v17, 1  ;;  %v627_v22 = vstv %s1825_s0  ;;  %v831_v17 = vmul.f32 %v2394_v26, %v2298_v0  ;;  %s1827_s23 = sld [smem:[#allocation9 + $0x1]] }
  0x42   :  { %224 = vrot.lane.b32.xlu0 %v220_v23, %s2206_s17  ;;  %v579_v23 = vmul.f32 %v575_v63, %v2298_v0  ;;  %v629_v24 = vmul.f32 %v627_v22, %v2302_v2  ;;  %v628_v46 = vmul.f32 %v627_v22, %v2310_v8  ;;  %v631_v63 = vmul.f32 %v627_v22, %v2298_v0  ;;  %s1834_s24 = sld [smem:[#allocation8 + $0x18]] }
  0x43   :  { %s1837_s25 = sld [smem:[#allocation9 + $0x2]] }
  0x44   :  { %s1841_s0 = sld [smem:[#allocation8 + $0x1e]] }
  0x45   :  { %s1844_s26 = sld [smem:[#allocation8 + $0x21]] }
  0x46   :  { %s1847_s27 = sld [smem:[#allocation9 + $0x3]] }
  0x49   :  { %230 = vrot.lane.b32.xlu1 %v223_v27, %s2206_s17  ;;  %254 = vrot.lane.b32.xlu2 %v250_v28, %s2207_s19  ;;  %v587_v27 = vrot.slane %v579_v23, 1  ;;  %v637_v28 = vrot.slane %v629_v24, 2 }
  0x4a   :  { %482 = vrot.lane.b32.xlu0 %v473_v29, %s2206_s17  ;;  %v829_v29 = vmul.f32 %v2394_v26, %v2302_v2 }
  0x51   :  { %480 = vrot.lane.b32.xlu1 %v472_v31, %s2206_s17  ;;  %484 = vrot.lane.b32.xlu2 %v474_v32, %s2206_s17 }
  0x52   :  { %258 = vrot.lane.b32.xlu0 %v252_v33, %s2207_s19  ;;  %v2401_v33 = vstv %s1812_s28  ;;  %s2210_s28 = smov 26  }
  0x53   :  { %v190_v11 = vmul.f32 %v2401_v33, %v2310_v8  ;;  %v193_v26 = vmul.f32 %v2401_v33, %v2298_v0 }
  0x59   :  { %260 = vrot.lane.b32.xlu1 %v253_v38, %s2207_s19  ;;  %308 = vrot.lane.b32.xlu2 %v303_v39, %s2206_s17  ;;  %v805_v38 = vmul.f32 %v801_v4, %v2298_v0  ;;  %v191_v39 = vmul.f32 %v2401_v33, %v2302_v2  ;;  %v192_v4 = vmul.f32 %v2401_v33, %v2300_v1 }
  0x5a   :  { %508 = vrot.lane.b32.xlu0 %v499_v40, %s2207_s19  ;;  %v2411_v40 = vstv %s1826_s29  ;;  %s2211_s29 = smov 52  }
  0x5b   :  { %v199_v45 = vrot.slane %v191_v39, 1 }
  0x61   :  { %506 = vrot.lane.b32.xlu1 %v498_v41, %s2207_s19  ;;  %510 = vrot.lane.b32.xlu2 %v500_v42, %s2207_s19  ;;  %v128_v41 = vmul.f32 %v127_v30, %v2310_v8  ;;  %v630_v42 = vmul.f32 %v627_v22, %v2300_v1  ;;  %v876_v22 = vmul.f32 %v2422_v57, %v2310_v8 }
  0x62   :  { %486 = vrot.lane.b32.xlu0 %v475_v43, %s2206_s17  ;;  %v659_v43 = vmul.f32 %v2411_v40, %v2302_v2 }
  0x63   :  { %v638_v52 = vrot.slane %v630_v42, 2  ;;  %v905_v42 = vstv %s1833_s12  ;;  %s2215_s12 = smov 91  }
  0x64   :  { %v667_v53 = vrot.slane %v659_v43, 2 }
  0x69   :  { %310 = vrot.lane.b32.xlu1 %v304_v48, %s2206_s17  ;;  %338 = vrot.lane.b32.xlu2 %v333_v49, %s2207_s19 }
  0x6a   :  { %306 = vrot.lane.b32.xlu0 %v302_v50, %s2206_s17 }
  0x71   :  { %560 = vrot.lane.b32.xlu1 %v555_v54, %s2206_s17  ;;  %312 = vrot.lane.b32.xlu2 %v305_v55, %s2206_s17  ;;  %v131_v54 = vmul.f32 %v127_v30, %v2298_v0 }
  0x72   :  { %512 = vrot.lane.b32.xlu0 %v501_v56, %s2207_s19  ;;  %v636_v56 = vrot.slane %v628_v46, 2  ;;  %v2463_v46 = vstv %s1839_s13  ;;  %s2216_s13 = smov 104  }
  0x79   :  { %340 = vrot.lane.b32.xlu1 %v334_v60, %s2207_s19  ;;  %558 = vrot.lane.b32.xlu2 %v554_v61, %s2206_s17  ;;  %v2425_v60 = vstv %s1815_s10  ;;  %s2213_s10 = smov 65  }
  0x7a   :  { %336 = vrot.lane.b32.xlu0 %v332_v62, %s2207_s19  ;;  %v877_v62 = vmul.f32 %v2422_v57, %v2302_v2 }
  0x81   :  { %590 = vrot.lane.b32.xlu1 %v585_v6, %s2207_s19  ;;  %812 = vrot.lane.b32.xlu2 %v803_v7, %s2206_s17  ;;  %v273_v6 = vmul.f32 %v2425_v60, %v2302_v2 }
  0x82   :  { %562 = vrot.lane.b32.xlu0 %v556_v9, %s2206_s17 }
  0x83   :  { %v2381_v13 = vpop.permute.xlu2 %152 }
  0x84   :  { %v161_v3 = vadd.f32 %v2381_v13, %v131_v54  ;;  %v885_v13 = vrot.slane %v877_v62, 1  ;;  %v1133_v54 = vmul.f32 %v2463_v46, %v2302_v2 }
  0x89   :  { %564 = vrot.lane.b32.xlu1 %v557_v14, %s2206_s17  ;;  %588 = vrot.lane.b32.xlu2 %v584_v15, %s2207_s19 }
  0x8a   :  { %342 = vrot.lane.b32.xlu0 %v335_v16, %s2207_s19  ;;  %v639_v16 = vrot.slane %v631_v63, 2 }
  0x8b   :  { %v173_v18 = vpop.permute.xlu2 %172 }
  0x91   :  { %810 = vrot.lane.b32.xlu1 %v802_v19, %s2206_s17  ;;  %814 = vrot.lane.b32.xlu2 %v804_v20, %s2206_s17  ;;  %v281_v19 = vrot.slane %v273_v6, 2  ;;  %v198_v20 = vrot.slane %v190_v11, 1 }
  0x92   :  { %592 = vrot.lane.b32.xlu0 %v586_v21, %s2207_s19  ;;  %v660_v21 = vmul.f32 %v2411_v40, %v2300_v1 }
  0x93   :  { %v227_v25 = vpop.permute.xlu2 %226 }
  0x99   :  { %594 = vrot.lane.b32.xlu1 %v587_v27, %s2207_s19  ;;  %642 = vrot.lane.b32.xlu2 %v637_v28, %s2206_s17  ;;  %v2453_v27 = vstv %s1818_s11  ;;  %s2214_s11 = smov 78  }
  0x9a   :  { %838 = vrot.lane.b32.xlu0 %v829_v29, %s2207_s19 }
  0x9b   :  { %v151_v31 = vpop.permute.xlu1 %150  ;;  %v257_v32 = vpop.permute.xlu2 %256 }
  0x9c   :  { %v149_v34 = vpop.permute.xlu0 %148  ;;  %v160_v7 = vadd.f32 %v151_v31, %v130_v58  ;;  %v464_v31 = vmul.f32 %v2453_v27, %v2300_v1  ;;  %v906_v58 = vmul.f32 %v905_v42, %v2310_v8 }
  0x9d   :  { %v159_v44 = vadd.f32 %v149_v34, %v129_v37  ;;  %v668_v37 = vrot.slane %v660_v21, 2 }
  0x9e   :  { %v914_v6 = vrot.slane %v906_v58, 1  ;;  %v1135_v58 = vmul.f32 %v2463_v46, %v2298_v0 }
  0xa1   :  { %836 = vrot.lane.b32.xlu1 %v828_v35, %s2207_s19  ;;  %840 = vrot.lane.b32.xlu2 %v830_v36, %s2207_s19 }
  0xa2   :  { %816 = vrot.lane.b32.xlu0 %v805_v38, %s2206_s17  ;;  %v884_v38 = vrot.slane %v876_v22, 1 }
  0xa3   :  { %v175_v47 = vpop.permute.xlu1 %174  ;;  %v255_v48 = vpop.permute.xlu2 %254 }
  0xa4   :  { %v185_v49 = vadd.f32 %v175_v47, %v159_v44  ;;  %v147_v50 = vpop.permute.xlu0 %146  ;;  %v907_v44 = vmul.f32 %v905_v42, %v2302_v2  ;;  %v878_v47 = vmul.f32 %v2422_v57, %v2300_v1 }
  0xa5   :  { %v158_v51 = vadd.f32 %v147_v50, %v128_v41  ;;  %v201_v41 = vrot.slane %v193_v26, 1  ;;  %v909_v26 = vmul.f32 %v905_v42, %v2298_v0 }
  0xa6   :  { %v207_v55 = vadd.f32 %v199_v45, %v185_v49 }
  0xa7   :  { %v184_v59 = vadd.f32 %v173_v18, %v158_v51  ;;  %v200_v18 = vrot.slane %v192_v4, 1 }
  0xa8   :  { %v237_v61 = vadd.f32 %v227_v25, %v207_v55  ;;  %v658_v25 = vmul.f32 %v2411_v40, %v2310_v8  ;;  %v886_v55 = vrot.slane %v878_v47, 1 }
  0xa9   :  { %644 = vrot.lane.b32.xlu1 %v638_v52, %s2206_s17  ;;  %672 = vrot.lane.b32.xlu2 %v667_v53, %s2207_s19  ;;  %v206_v30 = vadd.f32 %v198_v20, %v184_v59  ;;  %v915_v53 = vrot.slane %v907_v44, 1  ;;  %v661_v59 = vmul.f32 %v2411_v40, %v2298_v0  ;;  %v2497_v20 = vstv %s1821_s1  ;;  %s2217_s1 = smov 117  }
  0xaa   :  { %640 = vrot.lane.b32.xlu0 %v636_v56, %s2206_s17  ;;  %v267_v5 = vadd.f32 %v257_v32, %v237_v61  ;;  %v666_v39 = vrot.slane %v658_v25, 2  ;;  %v879_v56 = vmul.f32 %v2422_v57, %v2298_v0  ;;  %v275_v57 = vmul.f32 %v2425_v60, %v2298_v0 }
  0xab   :  { %v179_v9 = vpop.permute.xlu1 %178  ;;  %v485_v10 = vpop.permute.xlu2 %484 }
  0xac   :  { %v187_v12 = vadd.f32 %v179_v9, %v161_v3  ;;  %v177_v14 = vpop.permute.xlu0 %176  ;;  %v289_v24 = vadd.f32 %v281_v19, %v267_v5  ;;  %v494_v33 = vadd.f32 %v485_v10, %v464_v31  ;;  %v887_v5 = vrot.slane %v879_v56, 1 }
  0xad   :  { %v186_v15 = vadd.f32 %v177_v14, %v160_v7  ;;  %v669_v7 = vrot.slane %v661_v59, 2  ;;  %v463_v9 = vmul.f32 %v2453_v27, %v2302_v2  ;;  %v283_v40 = vrot.slane %v275_v57, 2 }
  0xae   :  { %v209_v45 = vadd.f32 %v201_v41, %v187_v12  ;;  %v908_v10 = vmul.f32 %v905_v42, %v2300_v1  ;;  %v1134_v19 = vmul.f32 %v2463_v46, %v2300_v1  ;;  %v274_v31 = vmul.f32 %v2425_v60, %v2300_v1 }
  0xaf   :  { %v208_v23 = vadd.f32 %v200_v18, %v186_v15  ;;  %v462_v15 = vmul.f32 %v2453_v27, %v2310_v8  ;;  %v1132_v18 = vmul.f32 %v2463_v46, %v2310_v8  ;;  %v987_v59 = vstv %s1836_s15 }
  0xb0   :  { %v916_v22 = vrot.slane %v908_v10, 1  ;;  %v282_v44 = vrot.slane %v274_v31, 2  ;;  %v1205_v10 = vstv %s1842_s5 }
  0xb1   :  { %890 = vrot.lane.b32.xlu1 %v885_v13, %s2206_s17  ;;  %646 = vrot.lane.b32.xlu2 %v639_v16, %s2206_s17 }
  0xb2   :  { %842 = vrot.lane.b32.xlu0 %v831_v17, %s2207_s19 }
  0xb3   :  { %v229_v28 = vpop.permute.xlu1 %228  ;;  %v309_v29 = vpop.permute.xlu2 %308 }
  0xb4   :  { %v238_v32 = vadd.f32 %v229_v28, %v208_v23  ;;  %v319_v34 = vadd.f32 %v309_v29, %v289_v24  ;;  %v225_v35 = vpop.permute.xlu0 %224  ;;  %v524_v23 = vmul.f32 %v2497_v20, %v2310_v8  ;;  %v957_v24 = vstv %s1835_s14  ;;  %s2218_s14 = smov 15  }
  0xb5   :  { %v236_v36 = vadd.f32 %v225_v35, %v206_v30  ;;  %v959_v28 = vmul.f32 %v957_v24, %v2302_v2  ;;  %v1157_v35 = vstv %s1840_s2  ;;  %s2219_s2 = smov 2  }
  0xb6   :  { %v532_v30 = vrot.slane %v524_v23, 1  ;;  %v1160_v56 = vmul.f32 %v1157_v35, %v2300_v1  ;;  %v988_v23 = vmul.f32 %v987_v59, %v2310_v8 }
  0xb7   :  { %v2457_v43 = vadd.f32 %v255_v48, %v236_v36  ;;  %v272_v36 = vmul.f32 %v2425_v60, %v2310_v8  ;;  %v967_v41 = vrot.slane %v959_v28, 2 }
  0xb9   :  { %674 = vrot.lane.b32.xlu1 %v668_v37, %s2207_s19  ;;  %888 = vrot.lane.b32.xlu2 %v884_v38, %s2206_s17 }
  0xba   :  { %670 = vrot.lane.b32.xlu0 %v666_v39, %s2207_s19  ;;  %v917_v39 = vrot.slane %v909_v26, 1 }
  0xbb   :  { %v231_v49 = vpop.permute.xlu1 %230  ;;  %v511_v50 = vpop.permute.xlu2 %510 }
  0xbc   :  { %v239_v51 = vadd.f32 %v231_v49, %v209_v45  ;;  %v2467_v48 = vadd.f32 %v511_v50, %v494_v33  ;;  %v483_v52 = vpop.permute.xlu0 %482  ;;  %v1159_v33 = vmul.f32 %v1157_v35, %v2302_v2  ;;  %v280_v45 = vrot.slane %v272_v36, 2 }
  0xbd   :  { %v493_v11 = vadd.f32 %v483_v52, %v463_v9 }
  0xc1   :  { %920 = vrot.lane.b32.xlu1 %v915_v53, %s2207_s19  ;;  %1142 = vrot.lane.b32.xlu2 %v1133_v54, %s2206_s17 }
  0xc2   :  { %892 = vrot.lane.b32.xlu0 %v886_v55, %s2206_s17  ;;  %v1158_v55 = vmul.f32 %v1157_v35, %v2310_v8 }
  0xc3   :  { %v481_v61 = vpop.permute.xlu1 %480  ;;  %v339_v62 = vpop.permute.xlu2 %338 }
  0xc4   :  { %v2479_v63 = vadd.f32 %v339_v62, %v319_v34  ;;  %v259_v3 = vpop.permute.xlu0 %258  ;;  %v492_v29 = vadd.f32 %v481_v61, %v462_v15  ;;  %v465_v61 = vmul.f32 %v2453_v27, %v2298_v0  ;;  %v989_v62 = vmul.f32 %v987_v59, %v2302_v2 }
  0xc5   :  { %v268_v4 = vadd.f32 %v259_v3, %v238_v32  ;;  %v958_v3 = vmul.f32 %v957_v24, %v2310_v8 }
  0xc6   :  { %v997_v9 = vrot.slane %v989_v62, 2  ;;  %v1287_v62 = vstv %s1845_s18 }
  0xc7   :  { %v290_v49 = vadd.f32 %v282_v44, %v268_v4 }
  0xc9   :  { %894 = vrot.lane.b32.xlu1 %v887_v5, %s2206_s17  ;;  %918 = vrot.lane.b32.xlu2 %v914_v6, %s2207_s19 }
  0xca   :  { %676 = vrot.lane.b32.xlu0 %v669_v7, %s2207_s19 }
  0xcb   :  { %v261_v12 = vpop.permute.xlu1 %260  ;;  %v313_v14 = vpop.permute.xlu2 %312 }
  0xcc   :  { %v269_v13 = vadd.f32 %v261_v12, %v239_v51  ;;  %v509_v16 = vpop.permute.xlu0 %508  ;;  %v288_v51 = vadd.f32 %v280_v45, %v2457_v43  ;;  %v960_v43 = vmul.f32 %v957_v24, %v2300_v1  ;;  %v961_v12 = vmul.f32 %v957_v24, %v2298_v0 }
  0xcd   :  { %v2491_v17 = vadd.f32 %v509_v16, %v493_v11  ;;  %v1207_v11 = vmul.f32 %v1205_v10, %v2302_v2  ;;  %v2557_v24 = vstv %s1828_s7 }
  0xce   :  { %v291_v21 = vadd.f32 %v283_v40, %v269_v13  ;;  %v968_v57 = vrot.slane %v960_v43, 2  ;;  %v966_v40 = vrot.slane %v958_v3, 2  ;;  %v1289_v3 = vmul.f32 %v1287_v62, %v2302_v2 }
  0xcf   :  { %v1215_v16 = vrot.slane %v1207_v11, 1  ;;  %v2601_v11 = vstv %s1831_s20  ;;  %s2220_s20 = smov [#allocation15]  }
  0xd0   :  { %v2501_v25 = vadd.f32 %v313_v14, %v291_v21  ;;  %v990_v21 = vmul.f32 %v987_v59, %v2300_v1 }
  0xd1   :  { %1140 = vrot.lane.b32.xlu1 %v1132_v18, %s2206_s17  ;;  %1144 = vrot.lane.b32.xlu2 %v1134_v19, %s2206_s17  ;;  %v969_v18 = vrot.slane %v961_v12, 2  ;;  %v1161_v19 = vmul.f32 %v1157_v35, %v2298_v0  ;;  %v1235_v35 = vstv %s1843_s16  ;;  %v792_v12 = vmul.f32 %v2557_v24, %v2310_v8 }
  0xd2   :  { %922 = vrot.lane.b32.xlu0 %v916_v22, %s2207_s19  ;;  %v1206_v22 = vmul.f32 %v1205_v10, %v2310_v8  ;;  %v998_v31 = vrot.slane %v990_v21, 2 }
  0xd3   :  { %v507_v32 = vpop.permute.xlu1 %506  ;;  %v559_v34 = vpop.permute.xlu2 %558 }
  0xd4   :  { %v518_v37 = vadd.f32 %v507_v32, %v492_v29  ;;  %v487_v38 = vpop.permute.xlu0 %486  ;;  %v794_v29 = vmul.f32 %v2557_v24, %v2300_v1  ;;  %v1214_v32 = vrot.slane %v1206_v22, 1  ;;  %v1291_v22 = vmul.f32 %v1287_v62, %v2298_v0 }
  0xd5   :  { %v495_v4 = vadd.f32 %v487_v38, %v465_v61  ;;  %v991_v38 = vmul.f32 %v987_v59, %v2298_v0 }
  0xd6   :  { %v540_v42 = vadd.f32 %v532_v30, %v518_v37  ;;  %v1237_v37 = vmul.f32 %v1235_v35, %v2302_v2 }
  0xd8   :  { %v570_v47 = vadd.f32 %v559_v34, %v540_v42  ;;  %v996_v34 = vrot.slane %v988_v23, 2  ;;  %v1245_v45 = vrot.slane %v1237_v37, 1 }
  0xd9   :  { %924 = vrot.lane.b32.xlu1 %v917_v39, %s2207_s19  ;;  %972 = vrot.lane.b32.xlu2 %v967_v41, %s2206_s17  ;;  %v1208_v39 = vmul.f32 %v1205_v10, %v2300_v1 }
  0xda   :  { %1168 = vrot.lane.b32.xlu0 %v1159_v33, %s2207_s19 }
  0xdb   :  { %v311_v50 = vpop.permute.xlu1 %310  ;;  %v2516_v60 = vpop.permute.xlu2 %812 }
  0xdc   :  { %v2519_v52 = vadd.f32 %v311_v50, %v290_v49  ;;  %v307_v53 = vpop.permute.xlu0 %306  ;;  %v1216_v49 = vrot.slane %v1208_v39, 1  ;;  %v1236_v50 = vmul.f32 %v1235_v35, %v2310_v8  ;;  %v1299_v39 = vrot.slane %v1291_v22, 2 }
  0xdd   :  { %v2521_v54 = vadd.f32 %v307_v53, %v288_v51  ;;  %v1238_v51 = vmul.f32 %v1235_v35, %v2300_v1  ;;  %v1209_v53 = vmul.f32 %v1205_v10, %v2298_v0 }
  0xde   :  { %v1244_v59 = vrot.slane %v1236_v50, 1 }
  0xdf   :  { %v1246_v61 = vrot.slane %v1238_v51, 1  ;;  %v1217_v43 = vrot.slane %v1209_v53, 1 }
  0xe1   :  { %1166 = vrot.lane.b32.xlu1 %v1158_v55, %s2207_s19  ;;  %1170 = vrot.lane.b32.xlu2 %v1160_v56, %s2207_s19 }
  0xe2   :  { %1146 = vrot.lane.b32.xlu0 %v1135_v58, %s2206_s17 }
  0xe3   :  { %v2535_v5 = vpop.permute.xlu1 %560  ;;  %v589_v46 = vpop.permute.xlu2 %588 }
  0xe4   :  { %v2537_v6 = vadd.f32 %v589_v46, %v570_v47  ;;  %v513_v7 = vpop.permute.xlu0 %512  ;;  %v999_v47 = vrot.slane %v991_v38, 2  ;;  %v1239_v46 = vmul.f32 %v1235_v35, %v2298_v0 }
  0xe5   :  { %v2539_v27 = vadd.f32 %v513_v7, %v495_v4  ;;  %v1288_v4 = vmul.f32 %v1287_v62, %v2310_v8 }
  0xe7   :  { %v1296_v10 = vrot.slane %v1288_v4, 2 }
  0xe9   :  { %974 = vrot.lane.b32.xlu1 %v968_v57, %s2206_s17  ;;  %1002 = vrot.lane.b32.xlu2 %v997_v9, %s2207_s19 }
  0xea   :  { %970 = vrot.lane.b32.xlu0 %v966_v40, %s2206_s17  ;;  %v1297_v40 = vrot.slane %v1289_v3, 2 }
  0xeb   :  { %v2546_v14 = vpop.permute.xlu1 %340  ;;  %v815_v15 = vpop.permute.xlu2 %814 }
  0xec   :  { %v2548_v13 = vpop.permute.xlu0 %336  ;;  %v824_v36 = vadd.f32 %v815_v15, %v794_v29  ;;  %v1247_v15 = vrot.slane %v1239_v46, 1 }
  0xf1   :  { %1220 = vrot.lane.b32.xlu1 %v1215_v16, %s2206_s17  ;;  %976 = vrot.lane.b32.xlu2 %v969_v18, %s2206_s17  ;;  %v854_v16 = vmul.f32 %v2601_v11, %v2310_v8  ;;  %v1317_v18 = vstv %s1846_s3  ;;  %s1794_s3 = sshll.u32 %s2220_s20, 4  ;;  %s1795_s3 = int_to_ptr.vmem [resolvable:$true] %s1794_s3 }
  0xf2   :  { %1172 = vrot.lane.b32.xlu0 %v1161_v19, %s2207_s19  ;;  %v525_v19 = vmul.f32 %v2497_v20, %v2302_v2  ;;  %v1319_v21 = vmul.f32 %v1317_v18, %v2302_v2  ;;  %v1320_v53 = vmul.f32 %v1317_v18, %v2300_v1 }
  0xf3   :  { %v2559_v26 = vpop.permute.xlu1 %590  ;;  %v2561_v28 = vpop.permute.xlu2 %642  ;;  %v862_v29 = vrot.slane %v854_v16, 1  ;;  %v348_v16 = vadd.f32 %v2548_v13, %v2521_v54 }
  0xf4   :  { %v2565_v30 = vpop.permute.xlu0 %562  ;;  %v533_v35 = vrot.slane %v525_v19, 1  ;;  %v1327_v38 = vrot.slane %v1319_v21, 2 }
  0xf9   :  { %1004 = vrot.lane.b32.xlu1 %v998_v31, %s2207_s19  ;;  %1218 = vrot.lane.b32.xlu2 %v1214_v32, %s2206_s17  ;;  %v1290_v31 = vmul.f32 %v1287_v62, %v2300_v1  ;;  %v526_v62 = vmul.f32 %v2497_v20, %v2300_v1 }
  0xfa   :  { %1000 = vrot.lane.b32.xlu0 %v996_v34, %s2207_s19 }
  0xfb   :  { %v2573_v41 = vpop.permute.xlu1 %564  ;;  %v841_v42 = vpop.permute.xlu2 %840 }
  0xfc   :  { %v2575_v33 = vadd.f32 %v841_v42, %v824_v36  ;;  %v2577_v44 = vpop.permute.xlu0 %342 }
 0x101   :  { %1250 = vrot.lane.b32.xlu1 %v1245_v45, %s2207_s19  ;;  %1006 = vrot.lane.b32.xlu2 %v999_v47, %s2207_s19  ;;  %v1298_v45 = vrot.slane %v1290_v31, 2  ;;  %v541_v47 = vadd.f32 %v533_v35, %v2491_v17 }
 0x102   :  { %1222 = vrot.lane.b32.xlu0 %v1216_v49, %s2206_s17  ;;  %v2618_v49 = vstv %s1824_s21 }
 0x103   :  { %v811_v55 = vpop.permute.xlu1 %810  ;;  %v2585_v56 = vpop.permute.xlu2 %672  ;;  %v607_v51 = vmul.f32 %v2618_v49, %v2302_v2  ;;  %v571_v17 = vadd.f32 %v2535_v5, %v541_v47  ;;  %v353_v5 = vstv %s352_s22  ;;  %v606_v21 = vmul.f32 %v2618_v49, %v2310_v8 }
 0x104   :  { %v2587_v58 = vpop.permute.xlu0 %592  ;;  %v822_v23 = vadd.f32 %v811_v55, %v792_v12  ;;  %v1321_v55 = vmul.f32 %v1317_v18, %v2298_v0 }
 0x105   :  { %v601_v4 = vadd.f32 %v2559_v26, %v571_v17  ;;  %v615_v46 = vrot.slane %v607_v51, 2  ;;  %v2644_v26 = vadd.f32 %v353_v5, %v2479_v63  ;;  %v614_v63 = vrot.slane %v606_v21, 2 }
 0x107   :  { %v623_v19 = vadd.f32 %v615_v46, %v601_v4  ;;  %v359_v35 = vmax.f32 %v2644_v26, 0.0 }
 0x109   :  { %1248 = vrot.lane.b32.xlu1 %v1244_v59, %s2207_s19  ;;  %1252 = vrot.lane.b32.xlu2 %v1246_v61, %s2207_s19  ;;  %v1318_v59 = vmul.f32 %v1317_v18, %v2310_v8  ;;  %v534_v18 = vrot.slane %v526_v62, 1  ;;  %v608_v8 = vmul.f32 %v2618_v49, %v2300_v1  ;;  %v653_v31 = vadd.f32 %v2561_v28, %v623_v19  ;;  %v2724_v19 = vld [vmem:[#allocation3 + $0x8] sm:$0xff] }
 0x10a   :  { %1224 = vrot.lane.b32.xlu0 %v1217_v43, %s2206_s17  ;;  %v609_v62 = vmul.f32 %v2618_v49, %v2298_v0 }
 0x10b   :  { %v2595_v7 = vpop.permute.xlu1 %594  ;;  %v2597_v57 = vpop.permute.xlu2 %646  ;;  %v1326_v12 = vrot.slane %v1318_v59, 2  ;;  %v542_v22 = vadd.f32 %v534_v18, %v2467_v48  ;;  %v683_v1 = vadd.f32 %v2585_v56, %v653_v31 }
 0x10c   :  { %v2599_v9 = vpop.permute.xlu0 %838 }
 0x111   :  { %1302 = vrot.lane.b32.xlu1 %v1297_v40, %s2206_s17  ;;  %1300 = vrot.lane.b32.xlu2 %v1296_v10, %s2206_s17  ;;  %v1328_v40 = vrot.slane %v1320_v53, 2  ;;  %v1329_v10 = vrot.slane %v1321_v55, 2  ;;  %v855_v55 = vmul.f32 %v2601_v11, %v2302_v2 }
 0x112   :  { %1254 = vrot.lane.b32.xlu0 %v1247_v15, %s2207_s19  ;;  %v350_v15 = vadd.f32 %v2546_v14, %v2519_v52  ;;  %v2648_v14 = vadd.f32 %v353_v5, %v348_v16 }
 0x113   :  { %v837_v32 = vpop.permute.xlu1 %836  ;;  %v889_v34 = vpop.permute.xlu2 %888 }
 0x114   :  { %v848_v36 = vadd.f32 %v837_v32, %v822_v23  ;;  %v2615_v37 = vpop.permute.xlu0 %816  ;;  %v2646_v52 = vadd.f32 %v353_v5, %v350_v15  ;;  %v572_v32 = vadd.f32 %v2565_v30, %v542_v22  ;;  %v358_v48 = vmax.f32 %v2648_v14, 0.0 }
 0x115   :  { %v622_v30 = vadd.f32 %v614_v63, %v2537_v6 }
 0x116   :  { %v870_v42 = vadd.f32 %v862_v29, %v848_v36  ;;  %v360_v36 = vmax.f32 %v2646_v52, 0.0  ;;  %v602_v28 = vadd.f32 %v2587_v58, %v572_v32  ;;  %v793_v58 = vmul.f32 %v2557_v24, %v2302_v2 }
 0x118   :  { %v900_v50 = vadd.f32 %v889_v34, %v870_v42  ;;  %v527_v34 = vmul.f32 %v2497_v20, %v2298_v0  ;;  %v616_v42 = vrot.slane %v608_v8, 2  ;;  %v823_v4 = vadd.f32 %v2516_v60, %v793_v58 }
 0x119   :  { %1332 = vrot.lane.b32.xlu1 %v1327_v38, %s2207_s19  ;;  %1306 = vrot.lane.b32.xlu2 %v1299_v39, %s2206_s17  ;;  %v351_v38 = vadd.f32 %v2577_v44, %v2501_v25  ;;  %v2669_v39 = vstv %s1827_s23  ;;  %v617_v60 = vrot.slane %v609_v62, 2  ;;  %s1796_s23 = sshll.u32 %s2976_s9, 4  ;;  %s1797_s23 = int_to_ptr.hbm [resolvable:$true] %s1796_s23 }
 0x11a   :  { %1304 = vrot.lane.b32.xlu0 %v1298_v45, %s2206_s17  ;;  %v535_v20 = vrot.slane %v527_v34, 1  ;;  %v2683_v25 = vadd.f32 %v2669_v39, %v683_v1  ;;  %v624_v47 = vadd.f32 %v616_v42, %v602_v28  ;;  %v849_v2 = vadd.f32 %v2599_v9, %v823_v4  ;;  %v2718_v9 = vld [vmem:[#allocation3 + $0x10] sm:$0xff] }
 0x11b   :  { %v645_v61 = vpop.permute.xlu1 %644  ;;  %v2629_v43 = vpop.permute.xlu2 %1142  ;;  %v2687_v45 = vadd.f32 %v353_v5, %v351_v38 }
 0x11c   :  { %v641_v3 = vpop.permute.xlu0 %640  ;;  %v654_v53 = vadd.f32 %v645_v61, %v624_v47  ;;  %v543_v59 = vadd.f32 %v535_v20, %v2539_v27  ;;  %v693_v17 = vmax.f32 %v2683_v25, 0.0  ;;  %v863_v27 = vrot.slane %v855_v55, 1  ;;  %v2744_v47 = vld [vmem:[#allocation3 + $0x18] sm:$0xff] }
 0x11d   :  { %v652_v44 = vadd.f32 %v641_v3, %v622_v30  ;;  %v361_v46 = vmax.f32 %v2687_v45, 0.0 }
 0x11e   :  { %v573_v61 = vadd.f32 %v2573_v41, %v543_v59  ;;  %v871_v18 = vadd.f32 %v863_v27, %v849_v2 }
 0x120   :  { %v603_v0 = vadd.f32 %v2595_v7, %v573_v61  ;;  %v935_v7 = vstv %s1834_s24 }
 0x121   :  { %1334 = vrot.lane.b32.xlu1 %v1328_v40, %s2207_s19  ;;  %1336 = vrot.lane.b32.xlu2 %v1329_v10, %s2207_s19  ;;  %v937_v21 = vmul.f32 %v2724_v19, %v935_v7 }
 0x122   :  { %1330 = vrot.lane.b32.xlu0 %v1326_v12, %s2207_s19  ;;  %s1838_s19 = sld [smem:[#allocation8 + $0x1b]] }
 0x123   :  { %v2650_v54 = vpop.permute.xlu1 %890  ;;  %v919_v13 = vpop.permute.xlu2 %918  ;;  %v945_v32 = vrot.slane %v937_v21, 2  ;;  %v856_v21 = vmul.f32 %v2718_v9, %v2601_v11 }
 0x124   :  { %v2655_v23 = vadd.f32 %v919_v13, %v900_v50  ;;  %v2657_v29 = vpop.permute.xlu0 %842  ;;  %v625_v13 = vadd.f32 %v617_v60, %v603_v0  ;;  %v901_v22 = vadd.f32 %v2650_v54, %v871_v18  ;;  %v939_v0 = vmul.f32 %v2744_v47, %v935_v7 }
 0x126   :  { %v655_v34 = vadd.f32 %v2597_v57, %v625_v13  ;;  %v1017_v57 = vstv %s1837_s25 }
 0x128   :  { %v2710_v49 = vstv %s1838_s19 }
 0x129   :  { %370 = vrot.lane.b32.xlu2 %v360_v36, %s2206_s17  ;;  %366 = vrot.lane.b32.xlu1 %v358_v48, %s2206_s17  ;;  %v1124_v16 = vmul.f32 %v2718_v9, %v2710_v49 }
 0x12a   :  { %368 = vrot.lane.b32.xlu0 %v359_v35, %s2206_s17 }
 0x12b   :  { %v675_v56 = vpop.permute.xlu1 %674  ;;  %v1145_v6 = vpop.permute.xlu2 %1144 }
 0x12c   :  { %v671_v50 = vpop.permute.xlu0 %670  ;;  %v684_v40 = vadd.f32 %v675_v56, %v654_v53  ;;  %v1154_v31 = vadd.f32 %v1145_v6, %v1124_v16 }
 0x12d   :  { %v682_v51 = vadd.f32 %v671_v50, %v652_v44  ;;  %v795_v50 = vmul.f32 %v2744_v47, %v2557_v24 }
 0x12e   :  { %v2716_v15 = vadd.f32 %v2669_v39, %v684_v40 }
 0x12f   :  { %v2696_v3 = vadd.f32 %v2669_v39, %v682_v51  ;;  %v825_v59 = vadd.f32 %v2615_v37, %v795_v50 }
 0x130   :  { %v694_v8 = vmax.f32 %v2716_v15, 0.0 }
 0x131   :  { %v692_v10 = vmax.f32 %v2696_v3, 0.0  ;;  %702 = vrot.lane.b32.xlu1 %v693_v17, %s2206_s17  ;;  %v851_v4 = vadd.f32 %v2657_v29, %v825_v59 }
 0x132   :  { %372 = vrot.lane.b32.xlu0 %v361_v46, %s2206_s17 }
 0x133   :  { %700 = vrot.lane.b32.xlu2 %v692_v10, %s2206_s17  ;;  %v921_v41 = vpop.permute.xlu1 %920  ;;  %v973_v12 = vpop.permute.xlu2 %972 }
 0x134   :  { %v2722_v5 = vpop.permute.xlu0 %892  ;;  %v931_v63 = vadd.f32 %v921_v41, %v901_v22 }
 0x136   :  { %v953_v20 = vadd.f32 %v945_v32, %v931_v63  ;;  %v864_v63 = vrot.slane %v856_v21, 1 }
 0x138   :  { %v983_v56 = vadd.f32 %v973_v12, %v953_v20  ;;  %v947_v12 = vrot.slane %v939_v0, 2  ;;  %v2770_v20 = vld [vmem:[#allocation3] sm:$0xff] }
 0x13a   :  { %704 = vrot.lane.b32.xlu0 %v694_v8, %s2206_s17 }
 0x13b   :  { %v895_v1 = vpop.permute.xlu1 %894  ;;  %v1171_v38 = vpop.permute.xlu2 %1170 }
 0x13c   :  { %v2733_v28 = vadd.f32 %v1171_v38, %v1154_v31  ;;  %v677_v42 = vpop.permute.xlu0 %676 }
 0x13d   :  { %v685_v30 = vadd.f32 %v677_v42, %v655_v34  ;;  %v938_v42 = vmul.f32 %v2718_v9, %v935_v7 }
 0x13f   :  { %v2736_v54 = vadd.f32 %v2669_v39, %v685_v30  ;;  %v857_v39 = vmul.f32 %v2744_v47, %v2601_v11 }
 0x141   :  { %v695_v44 = vmax.f32 %v2736_v54, 0.0  ;;  %v865_v40 = vrot.slane %v857_v39, 1  ;;  %v946_v39 = vrot.slane %v938_v42, 2 }
 0x143   :  { %706 = vrot.lane.b32.xlu1 %v695_v44, %s2206_s17  ;;  %v2742_v6 = vpop.permute.xlu1 %1140  ;;  %v1003_v58 = vpop.permute.xlu2 %1002  ;;  %v873_v27 = vadd.f32 %v865_v40, %v851_v4 }
 0x144   :  { %v1013_v51 = vadd.f32 %v1003_v58, %v983_v56  ;;  %v923_v53 = vpop.permute.xlu0 %922  ;;  %v936_v56 = vmul.f32 %v2770_v20, %v935_v7 }
 0x145   :  { %v903_v60 = vadd.f32 %v895_v1, %v873_v27  ;;  %v872_v1 = vadd.f32 %v864_v63, %v2575_v33 }
 0x146   :  { %v2750_v55 = vadd.f32 %v1017_v57, %v1013_v51  ;;  %v944_v59 = vrot.slane %v936_v56, 2 }
 0x147   :  { %v902_v11 = vadd.f32 %v2722_v5, %v872_v1  ;;  %v1122_v1 = vmul.f32 %v2770_v20, %v2710_v49 }
 0x148   :  { %v1023_v62 = vmax.f32 %v2750_v55, 0.0  ;;  %v952_v40 = vadd.f32 %v944_v59, %v2655_v23 }
 0x149   :  { %v932_v51 = vadd.f32 %v923_v53, %v902_v11 }
 0x14a   :  { %1032 = vrot.lane.b32.xlu2 %v1023_v62, %s2206_s17 }
 0x14b   :  { %v925_v61 = vpop.permute.xlu1 %924  ;;  %v977_v24 = vpop.permute.xlu2 %976  ;;  %v954_v4 = vadd.f32 %v946_v39, %v932_v51 }
 0x14c   :  { %v1169_v2 = vpop.permute.xlu0 %1168  ;;  %v933_v41 = vadd.f32 %v925_v61, %v903_v60 }
 0x14e   :  { %v955_v29 = vadd.f32 %v947_v12, %v933_v41 }
 0x150   :  { %v985_v13 = vadd.f32 %v977_v24, %v955_v29 }
 0x153   :  { %v2759_v16 = vpop.permute.xlu1 %1166  ;;  %v2761_v37 = vpop.permute.xlu2 %1218 }
 0x154   :  { %v1147_v18 = vpop.permute.xlu0 %1146 }
 0x15b   :  { %v975_v22 = vpop.permute.xlu1 %974  ;;  %v1007_v31 = vpop.permute.xlu2 %1006 }
 0x15c   :  { %v1015_v32 = vadd.f32 %v1007_v31, %v985_v13  ;;  %v971_v34 = vpop.permute.xlu0 %970  ;;  %v984_v61 = vadd.f32 %v975_v22, %v954_v4  ;;  %v1183_v22 = vstv %s1841_s0  ;;  %v1125_v31 = vmul.f32 %v2744_v47, %v2710_v49 }
 0x15d   :  { %v982_v24 = vadd.f32 %v971_v34, %v952_v40  ;;  %v1185_v63 = vmul.f32 %v2724_v19, %v1183_v22  ;;  %v1184_v4 = vmul.f32 %v2770_v20, %v1183_v22 }
 0x15e   :  { %v2765_v38 = vadd.f32 %v1017_v57, %v1015_v32  ;;  %v1187_v32 = vmul.f32 %v2744_v47, %v1183_v22  ;;  %v1155_v42 = vadd.f32 %v1147_v18, %v1125_v31 }
 0x15f   :  { %v1193_v39 = vrot.slane %v1185_v63, 1 }
 0x160   :  { %v1025_v30 = vmax.f32 %v2765_v38, 0.0 }
 0x162   :  { %1036 = vrot.lane.b32.xlu2 %v1025_v30, %s2206_s17 }
 0x163   :  { %v1221_v58 = vpop.permute.xlu1 %1220  ;;  %v2777_v50 = vpop.permute.xlu2 %1252 }
 0x164   :  { %v1173_v33 = vpop.permute.xlu0 %1172 }
 0x165   :  { %v1181_v40 = vadd.f32 %v1173_v33, %v1155_v42 }
 0x16b   :  { %v1005_v27 = vpop.permute.xlu1 %1004  ;;  %v2780_v7 = vpop.permute.xlu2 %1300 }
 0x16c   :  { %v1014_v5 = vadd.f32 %v1005_v27, %v984_v61  ;;  %v1001_v0 = vpop.permute.xlu0 %1000  ;;  %v1265_v61 = vstv %s1844_s26  ;;  %v1186_v27 = vmul.f32 %v2718_v9, %v1183_v22 }
 0x16d   :  { %v1012_v60 = vadd.f32 %v1001_v0, %v982_v24  ;;  %v1195_v24 = vrot.slane %v1187_v32, 1 }
 0x16e   :  { %v2782_v41 = vadd.f32 %v1017_v57, %v1014_v5  ;;  %v1152_v5 = vadd.f32 %v2742_v6, %v1122_v1  ;;  %v1194_v31 = vrot.slane %v1186_v27, 1 }
 0x16f   :  { %v2784_v12 = vadd.f32 %v1017_v57, %v1012_v60  ;;  %v1123_v57 = vmul.f32 %v2724_v19, %v2710_v49  ;;  %v1269_v49 = vmul.f32 %v2744_v47, %v1265_v61  ;;  %v1192_v60 = vrot.slane %v1184_v4, 1 }
 0x170   :  { %v1024_v53 = vmax.f32 %v2782_v41, 0.0  ;;  %v1178_v18 = vadd.f32 %v2759_v16, %v1152_v5  ;;  %v1202_v47 = vadd.f32 %v1194_v31, %v2733_v28 }
 0x171   :  { %v1022_v29 = vmax.f32 %v2784_v12, 0.0  ;;  %v1153_v34 = vadd.f32 %v2629_v43, %v1123_v57  ;;  %v1267_v43 = vmul.f32 %v2724_v19, %v1265_v61  ;;  %v1277_v6 = vrot.slane %v1269_v49, 2 }
 0x172   :  { %1034 = vrot.lane.b32.xlu1 %v1024_v53, %s2206_s17 }
 0x173   :  { %1030 = vrot.lane.b32.xlu0 %v1022_v29, %s2206_s17  ;;  %v1251_v23 = vpop.permute.xlu1 %1250  ;;  %v1307_v21 = vpop.permute.xlu2 %1306  ;;  %v1179_v51 = vadd.f32 %v1169_v2, %v1153_v34  ;;  %v1203_v2 = vadd.f32 %v1195_v24, %v1181_v40  ;;  %v1275_v32 = vrot.slane %v1267_v43, 2 }
 0x174   :  { %v1223_v13 = vpop.permute.xlu0 %1222 }
 0x175   :  { %v1201_v0 = vadd.f32 %v1193_v39, %v1179_v51  ;;  %v1200_v51 = vadd.f32 %v1192_v60, %v1178_v18  ;;  %v1266_v39 = vmul.f32 %v2770_v20, %v1265_v61  ;;  %v2208_v18 = vmov 0.0  }
 0x176   :  { %121 = vst [vmem:[#allocation2] sm:$0xff] %v2208_v18 }
 0x177   :  { %v1231_v57 = vadd.f32 %v1221_v58, %v1201_v0  ;;  %v1268_v58 = vmul.f32 %v2718_v9, %v1265_v61  ;;  %v1230_v52 = vadd.f32 %v2761_v37, %v1200_v51  ;;  %v1274_v24 = vrot.slane %v1266_v39, 2 }
 0x178   :  { %v1347_v9 = vstv %s1847_s27 }
 0x179   :  { %v1261_v42 = vadd.f32 %v1251_v23, %v1231_v57  ;;  %v1276_v20 = vrot.slane %v1268_v58, 2 }
 0x17b   :  { %v1249_v56 = vpop.permute.xlu1 %1248  ;;  %v1337_v11 = vpop.permute.xlu2 %1336  ;;  %v1283_v4 = vadd.f32 %v1275_v32, %v1261_v42 }
 0x17c   :  { %v1225_v59 = vpop.permute.xlu0 %1224  ;;  %v1260_v27 = vadd.f32 %v1249_v56, %v1230_v52 }
 0x17d   :  { %v1233_v63 = vadd.f32 %v1225_v59, %v1203_v2  ;;  %v1232_v59 = vadd.f32 %v1223_v13, %v1202_v47 }
 0x17e   :  { %v1282_v61 = vadd.f32 %v1274_v24, %v1260_v27 }
 0x17f   :  { %v1262_v28 = vadd.f32 %v2777_v50, %v1232_v59 }
 0x181   :  { %v1284_v60 = vadd.f32 %v1276_v20, %v1262_v28 }
 0x183   :  { %v1303_v34 = vpop.permute.xlu1 %1302  ;;  %v371_v33 = vpop.permute.xlu2 %370 }
 0x184   :  { %v380_v22 = vmax.f32 %v360_v36, %v371_v33  ;;  %v1255_v1 = vpop.permute.xlu0 %1254  ;;  %v1313_v36 = vadd.f32 %v1303_v34, %v1283_v4 }
 0x185   :  { %v1263_v19 = vadd.f32 %v1255_v1, %v1233_v63 }
 0x186   :  { %v388_v16 = vrot.slane %v380_v22, 1 }
 0x187   :  { %v1285_v23 = vadd.f32 %v1277_v6, %v1263_v19 }
 0x188   :  { %v2814_v40 = vmax.f32 %v380_v22, %v388_v16 }
 0x189   :  { %v1315_v0 = vadd.f32 %v1307_v21, %v1285_v23  ;;  %v1312_v21 = vadd.f32 %v2780_v7, %v1282_v61 }
 0x18a   :  { %440 = vst.sshfl [vmem:[#allocation1 + $0x20] sm:$0xff pattern:$0x75316420] %v2814_v40 }
 0x18b   :  { %v1333_v5 = vpop.permute.xlu1 %1332  ;;  %v1345_v2 = vadd.f32 %v1337_v11, %v1315_v0 }
 0x18c   :  { %v1343_v43 = vadd.f32 %v1333_v5, %v1313_v36  ;;  %v1305_v49 = vpop.permute.xlu0 %1304 }
 0x18d   :  { %v1314_v57 = vadd.f32 %v1305_v49, %v1284_v60  ;;  %v2826_v63 = vadd.f32 %v1347_v9, %v1345_v2  ;;  %v701_v51 = vpop.permute.xlu2 %700 }
 0x18e   :  { %v2819_v13 = vadd.f32 %v1347_v9, %v1343_v43  ;;  %v712_v39 = vmax.f32 %v692_v10, %v701_v51  ;;  %v407_v43 = vrot.slane %v2814_v40, 6 }
 0x18f   :  { %v1355_v11 = vmax.f32 %v2826_v63, 0.0 }
 0x190   :  { %v1353_v37 = vmax.f32 %v2819_v13, 0.0  ;;  %v720_v14 = vrot.slane %v712_v39, 1 }
 0x192   :  { %1362 = vrot.lane.b32.xlu0 %v1353_v37, %s2206_s17  ;;  %v728_v20 = vmax.f32 %v712_v39, %v720_v14 }
 0x193   :  { %v1335_v50 = vpop.permute.xlu1 %1334 }
 0x194   :  { %v1344_v56 = vadd.f32 %v1335_v50, %v1314_v57  ;;  %v1331_v31 = vpop.permute.xlu0 %1330  ;;  %v442_v50 = vld [vmem:[#allocation1 + $0x21] ss:$2 sm:$0xff] }
 0x195   :  { %v1342_v34 = vadd.f32 %v1331_v31, %v1312_v21 }
 0x196   :  { %v2828_v33 = vadd.f32 %v1347_v9, %v1344_v56 }
 0x197   :  { %v2830_v42 = vadd.f32 %v1347_v9, %v1342_v34 }
 0x198   :  { %v1354_v32 = vmax.f32 %v2828_v33, 0.0 }
 0x199   :  { %v1352_v22 = vmax.f32 %v2830_v42, 0.0 }
 0x19a   :  { %1366 = vrot.lane.b32.xlu0 %v1355_v11, %s2206_s17  ;;  %1364 = vrot.lane.b32.xlu2 %v1354_v32, %s2206_s17 }
 0x19b   :  { %1360 = vrot.lane.b32.xlu1 %v1352_v22, %s2206_s17  ;;  %v367_v7 = vpop.permute.xlu1 %366  ;;  %s2209_s17 = smov 13  }
 0x19c   :  { %v369_v6 = vpop.permute.xlu0 %368  ;;  %v378_v1 = vmax.f32 %v358_v48, %v367_v7 }
 0x19d   :  { %v379_v19 = vmax.f32 %v359_v35, %v369_v6 }
 0x19e   :  { %v386_v47 = vrot.slane %v378_v1, 1 }
 0x19f   :  { %v387_v16 = vrot.slane %v379_v19, 1 }
 0x1a0   :  { %v394_v58 = vmax.f32 %v378_v1, %v386_v47 }
 0x1a1   :  { %v395_v59 = vmax.f32 %v379_v19, %v387_v16 }
 0x1a2   :  { %v420_v4 = vrot.slane %v394_v58, 2  ;;  %434 = vst.sshfl [vmem:[#allocation1] sm:$0xff pattern:$0x75316420] %v394_v58 }
 0x1a3   :  { %v402_v23 = vrot.slane %v395_v59, 7  ;;  %v421_v52 = vrot.slane %v395_v59, 1  ;;  %437 = vst.sshfl [vmem:[#allocation1 + $0x10] sm:$0xff pattern:$0x75316420] %v395_v59  ;;  %v703_v36 = vpop.permute.xlu1 %702 }
 0x1a4   :  { %v373_v48 = vpop.permute.xlu0 %372  ;;  %v713_v26 = vmax.f32 %v693_v17, %v703_v36  ;;  %v1033_v28 = vpop.permute.xlu2 %1032 }
 0x1a5   :  { %v404_v35 = vsel %vm403_vm0, %v402_v23, %v394_v58  ;;  %v422_v3 = vsel %vm403_vm0, %v421_v52, %v420_v4  ;;  %v381_v10 = vmax.f32 %v361_v46, %v373_v48  ;;  %v1043_v45 = vmax.f32 %v1023_v62, %v1033_v28 }
 0x1a6   :  { %v721_v24 = vrot.slane %v713_v26, 1  ;;  %v406_v27 = vsel %vm405_vm1, %v402_v23, %v404_v35  ;;  %v423_v0 = vsel %vm405_vm1, %v421_v52, %v422_v3  ;;  %v750_v4 = vrot.slane %v728_v20, 2 }
 0x1a7   :  { %v389_v5 = vrot.slane %v381_v10, 1  ;;  %v409_v9 = vsel %vm408_vm2, %v407_v43, %v406_v27  ;;  %v424_v46 = vsel %vm408_vm2, %v2814_v40, %v423_v0  ;;  %v1051_v31 = vrot.slane %v1043_v45, 1 }
 0x1a8   :  { %v729_v25 = vmax.f32 %v713_v26, %v721_v24  ;;  %v425_v55 = vsel %vm410_vm3, %v2814_v40, %v424_v46  ;;  %v411_v56 = vsel %vm410_vm3, %v407_v43, %v409_v9 }
 0x1a9   :  { %v436_v17 = vld [vmem:[#allocation1 + $0x1] ss:$2 sm:$0xff]  ;;  %v397_v49 = vmax.f32 %v381_v10, %v389_v5  ;;  %v2876_v16 = vmax.f32 %v1043_v45, %v1051_v31 }
 0x1aa   :  { %764 = vst.sshfl [vmem:[#allocation1] sm:$0xff pattern:$0x75316420] %v728_v20  ;;  %v439_v61 = vld [vmem:[#allocation1 + $0x11] ss:$2 sm:$0xff]  ;;  %v736_v40 = vrot.slane %v729_v25, 7 }
 0x1ab   :  { %v412_v18 = vrot.slane %v397_v49, 5  ;;  %443 = vst.sshfl [vmem:[#allocation1 + $0x30] sm:$0xff pattern:$0x75316420] %v397_v49  ;;  %v446_v60 = vrot.slane %v439_v61, 7  ;;  %v426_v57 = vrot.slane %v397_v49, 7 }
 0x1ac   :  { %767 = vst.sshfl [vmem:[#allocation1 + $0x10] sm:$0xff pattern:$0x75316420] %v729_v25  ;;  %v705_v2 = vpop.permute.xlu0 %704  ;;  %v751_v47 = vrot.slane %v729_v25, 1  ;;  %v737_v52 = vsel %vm403_vm0, %v736_v40, %v728_v20 }
 0x1ad   :  { %v714_v21 = vmax.f32 %v694_v8, %v705_v2  ;;  %v447_v62 = vsel %vm403_vm0, %v446_v60, %v436_v17  ;;  %v427_v34 = vsel %vm413_vm4, %v426_v57, %v425_v55  ;;  %v414_v7 = vsel %vm413_vm4, %v412_v18, %v411_v56 }
 0x1ae   :  { %v428_v1 = vsel %vm415_vm5, %v426_v57, %v427_v34  ;;  %v448_v51 = vsel %vm405_vm1, %v446_v60, %v447_v62  ;;  %v416_v15 = vsel %vm415_vm5, %v412_v18, %v414_v7  ;;  %v449_v8 = vrot.slane %v442_v50, 6 }
 0x1af   :  { %v722_v6 = vrot.slane %v714_v21, 1  ;;  %429 = vrot.lane.b32.xlu1 %v428_v1, %s2209_s17  ;;  %419 = vst.msk [vmem:[#allocation2] sm:$0xf] %vm418_vm6, %v416_v15  ;;  %v752_v48 = vsel %vm403_vm0, %v751_v47, %v750_v4  ;;  %v738_v5 = vsel %vm405_vm1, %v736_v40, %v737_v52 }
 0x1b0   :  { %v450_v58 = vsel %vm408_vm2, %v449_v8, %v448_v51  ;;  %v753_v27 = vsel %vm405_vm1, %v751_v47, %v752_v48  ;;  %v1066_v47 = vrot.slane %v2876_v16, 7 }
 0x1b1   :  { %v730_v19 = vmax.f32 %v714_v21, %v722_v6  ;;  %v451_v14 = vsel %vm410_vm3, %v449_v8, %v450_v58  ;;  %v766_v45 = vld [vmem:[#allocation1 + $0x1] ss:$2 sm:$0xff] }
 0x1b2   :  { %v445_v39 = vld [vmem:[#allocation1 + $0x31] ss:$2 sm:$0xff] }
 0x1b3   :  { %v769_v59 = vld [vmem:[#allocation1 + $0x11] ss:$2 sm:$0xff]  ;;  %770 = vst.sshfl [vmem:[#allocation1 + $0x20] sm:$0xff pattern:$0x75316420] %v730_v19  ;;  %v452_v23 = vrot.slane %v445_v39, 5  ;;  %v754_v0 = vsel %vm408_vm2, %v730_v19, %v753_v27 }
 0x1b4   :  { %1097 = vst.sshfl [vmem:[#allocation1 + $0x10] sm:$0xff pattern:$0x75316420] %v2876_v16  ;;  %v739_v26 = vrot.slane %v730_v19, 6  ;;  %v776_v20 = vrot.slane %v769_v59, 7  ;;  %v755_v9 = vsel %vm410_vm3, %v730_v19, %v754_v0  ;;  %v1081_v59 = vrot.slane %v2876_v16, 1 }
 0x1b5   :  { %v707_v36 = vpop.permute.xlu1 %706  ;;  %v453_v3 = vsel %vm413_vm4, %v452_v23, %v451_v14 }
 0x1b6   :  { %v715_v35 = vmax.f32 %v695_v44, %v707_v36  ;;  %v454_v10 = vsel %vm415_vm5, %v452_v23, %v453_v3  ;;  %v740_v43 = vsel %vm408_vm2, %v739_v26, %v738_v5  ;;  %v777_v60 = vsel %vm403_vm0, %v776_v20, %v766_v45 }
 0x1b7   :  { %455 = vrot.lane.b32.xlu2 %v454_v10, %s2210_s28  ;;  %v741_v61 = vsel %vm410_vm3, %v739_v26, %v740_v43 }
 0x1b8   :  { %v723_v24 = vrot.slane %v715_v35, 1 }
 0x1ba   :  { %v731_v28 = vmax.f32 %v715_v35, %v723_v24  ;;  %v772_v25 = vld [vmem:[#allocation1 + $0x21] ss:$2 sm:$0xff] }
 0x1bb   :  { %v779_v2 = vrot.slane %v772_v25, 6  ;;  %v1099_v14 = vld [vmem:[#allocation1 + $0x11] ss:$2 sm:$0xff] }
 0x1bc   :  { %773 = vst.sshfl [vmem:[#allocation1 + $0x30] sm:$0xff pattern:$0x75316420] %v731_v28  ;;  %v1037_v54 = vpop.permute.xlu2 %1036  ;;  %v756_v44 = vrot.slane %v731_v28, 7  ;;  %v742_v17 = vrot.slane %v731_v28, 5  ;;  %v1106_v27 = vrot.slane %v1099_v14, 7 }
 0x1bd   :  { %v1045_v49 = vmax.f32 %v1025_v30, %v1037_v54  ;;  %v778_v30 = vsel %vm405_vm1, %v776_v20, %v777_v60 }
 0x1be   :  { %v757_v46 = vsel %vm413_vm4, %v756_v44, %v755_v9  ;;  %v743_v18 = vsel %vm413_vm4, %v742_v17, %v741_v61  ;;  %v780_v55 = vsel %vm408_vm2, %v779_v2, %v778_v30 }
 0x1bf   :  { %v1053_v57 = vrot.slane %v1045_v49, 1  ;;  %v758_v50 = vsel %vm415_vm5, %v756_v44, %v757_v46  ;;  %v744_v21 = vsel %vm415_vm5, %v742_v17, %v743_v18  ;;  %v781_v31 = vsel %vm410_vm3, %v779_v2, %v780_v55 }
 0x1c0   :  { %759 = vrot.lane.b32.xlu1 %v758_v50, %s2211_s29  ;;  %745 = vrot.lane.b32.xlu0 %v744_v21, %s2212_s30 }
 0x1c1   :  { %v1061_v38 = vmax.f32 %v1045_v49, %v1053_v57 }
 0x1c3   :  { %v775_v62 = vld [vmem:[#allocation1 + $0x31] ss:$2 sm:$0xff]  ;;  %v1086_v26 = vrot.slane %v1061_v38, 7 }
 0x1c4   :  { %v782_v56 = vrot.slane %v775_v62, 5  ;;  %1103 = vst.sshfl [vmem:[#allocation1 + $0x30] sm:$0xff pattern:$0x75316420] %v1061_v38 }
 0x1c6   :  { %v783_v34 = vsel %vm413_vm4, %v782_v56, %v781_v31 }
 0x1c7   :  { %v784_v7 = vsel %vm415_vm5, %v782_v56, %v783_v34 }
 0x1c8   :  { %785 = vrot.lane.b32.xlu2 %v784_v7, %s2213_s10 }
 0x1cb   :  { %v1105_v0 = vld [vmem:[#allocation1 + $0x31] ss:$2 sm:$0xff] }
 0x1cc   :  { %v1112_v49 = vrot.slane %v1105_v0, 5 }
 0x1e4   :  { %v1035_v6 = vpop.permute.xlu1 %1034 }
 0x1e5   :  { %v1031_v1 = vpop.permute.xlu0 %1030  ;;  %v1044_v51 = vmax.f32 %v1024_v53, %v1035_v6 }
 0x1e6   :  { %v1042_v15 = vmax.f32 %v1022_v29, %v1031_v1  ;;  %v1072_v29 = vrot.slane %v1061_v38, 5 }
 0x1e7   :  { %v1052_v8 = vrot.slane %v1044_v51, 1 }
 0x1e8   :  { %v1050_v40 = vrot.slane %v1042_v15, 1 }
 0x1e9   :  { %v1060_v19 = vmax.f32 %v1044_v51, %v1052_v8 }
 0x1ea   :  { %v1058_v39 = vmax.f32 %v1042_v15, %v1050_v40 }
 0x1eb   :  { %v1069_v58 = vrot.slane %v1060_v19, 6  ;;  %1100 = vst.sshfl [vmem:[#allocation1 + $0x20] sm:$0xff pattern:$0x75316420] %v1060_v19 }
 0x1ec   :  { %v1067_v4 = vsel %vm403_vm0, %v1066_v47, %v1058_v39  ;;  %v1080_v23 = vrot.slane %v1058_v39, 2  ;;  %1094 = vst.sshfl [vmem:[#allocation1] sm:$0xff pattern:$0x75316420] %v1058_v39 }
 0x1ed   :  { %v1068_v41 = vsel %vm405_vm1, %v1066_v47, %v1067_v4 }
 0x1ee   :  { %v1082_v53 = vsel %vm403_vm0, %v1081_v59, %v1080_v23  ;;  %v1070_v12 = vsel %vm408_vm2, %v1069_v58, %v1068_v41 }
 0x1ef   :  { %v1071_v52 = vsel %vm410_vm3, %v1069_v58, %v1070_v12  ;;  %v1083_v36 = vsel %vm405_vm1, %v1081_v59, %v1082_v53 }
 0x1f0   :  { %v1073_v48 = vsel %vm413_vm4, %v1072_v29, %v1071_v52  ;;  %v1084_v16 = vsel %vm408_vm2, %v1060_v19, %v1083_v36 }
 0x1f1   :  { %v1074_v35 = vsel %vm415_vm5, %v1072_v29, %v1073_v48  ;;  %v1085_v3 = vsel %vm410_vm3, %v1060_v19, %v1084_v16 }
 0x1f2   :  { %1075 = vrot.lane.b32.xlu0 %v1074_v35, %s2214_s11  ;;  %v1087_v10 = vsel %vm413_vm4, %v1086_v26, %v1085_v3  ;;  %v1102_v24 = vld [vmem:[#allocation1 + $0x21] ss:$2 sm:$0xff] }
 0x1f3   :  { %v1088_v5 = vsel %vm415_vm5, %v1086_v26, %v1087_v10  ;;  %v1096_v28 = vld [vmem:[#allocation1 + $0x1] ss:$2 sm:$0xff]  ;;  %v1109_v43 = vrot.slane %v1102_v24, 6 }
 0x1f4   :  { %1089 = vrot.lane.b32.xlu2 %v1088_v5, %s2215_s12  ;;  %v1365_v20 = vpop.permute.xlu2 %1364  ;;  %v1107_v25 = vsel %vm403_vm0, %v1106_v27, %v1096_v28  ;;  %v1991_v5 = vld [vmem:[#allocation10 + $0x78] sm:$0xff] }
 0x1f5   :  { %v1374_v54 = vmax.f32 %v1354_v32, %v1365_v20  ;;  %v1108_v44 = vsel %vm405_vm1, %v1106_v27, %v1107_v25  ;;  %v1983_v27 = vld [vmem:[#allocation10 + $0x38] sm:$0xff]  ;;  %1609 = vmatpush.bf16.msra.mxu1 %v1991_v5  ;;  %v1982_v20 = vld [vmem:[#allocation10 + $0x30] sm:$0xff] }
 0x1f6   :  { %v1110_v17 = vsel %vm408_vm2, %v1109_v43, %v1108_v44  ;;  %1596 = vmatpush.bf16.msra.mxu0 %v1983_v27  ;;  %v1990_v25 = vld [vmem:[#allocation10 + $0x70] sm:$0xff]  ;;  %v1989_v44 = vld [vmem:[#allocation10 + $0x68] sm:$0xff] }
 0x1f7   :  { %v1382_v9 = vrot.slane %v1374_v54, 1  ;;  %v1111_v61 = vsel %vm410_vm3, %v1109_v43, %v1110_v17  ;;  %v1980_v17 = vld [vmem:[#allocation10 + $0x20] sm:$0xff] }
 0x1f8   :  { %v1113_v45 = vsel %vm413_vm4, %v1112_v49, %v1111_v61  ;;  %v1987_v61 = vld [vmem:[#allocation10 + $0x58] sm:$0xff] }
 0x1f9   :  { %v1390_v46 = vmax.f32 %v1374_v54, %v1382_v9  ;;  %v1114_v18 = vsel %vm415_vm5, %v1112_v49, %v1113_v45  ;;  %1610 = vmatpush.bf16.msra.mxu1 %v1990_v25  ;;  %v1981_v54 = vld [vmem:[#allocation10 + $0x28] sm:$0xff]  ;;  %v1988_v49 = vld [vmem:[#allocation10 + $0x60] sm:$0xff]  ;;  %v1979_v9 = vld [vmem:[#allocation10 + $0x18] sm:$0xff] }
 0x1fa   :  { %1115 = vrot.lane.b32.xlu0 %v1114_v18, %s2216_s13  ;;  %1597 = vmatpush.bf16.msra.mxu0 %v1982_v20  ;;  %v1978_v45 = vld [vmem:[#allocation10 + $0x10] sm:$0xff]  ;;  %v1977_v18 = vld [vmem:[#allocation10 + $0x8] sm:$0xff] }
 0x1fb   :  { %1435 = vst.sshfl [vmem:[#allocation1 + $0x20] sm:$0xff pattern:$0x75316420] %v1390_v46  ;;  %v1399_v34 = vrot.slane %v1390_v46, 6 }
 0x1fd   :  { %1611 = vmatpush.bf16.msra.mxu1 %v1989_v44 }
 0x1fe   :  { %1598 = vmatpush.bf16.msra.mxu0 %v1981_v54 }
 0x201   :  { %1612 = vmatpush.bf16.msra.mxu1 %v1988_v49 }
 0x202   :  { %v1437_v19 = vld [vmem:[#allocation1 + $0x21] ss:$2 sm:$0xff]  ;;  %1599 = vmatpush.bf16.msra.mxu0 %v1980_v17 }
 0x203   :  { %v1444_v23 = vrot.slane %v1437_v19, 6  ;;  %v2033_v19 = vld [vmem:[%s2971_s4] ss:$0 sm:$0xff] }
 0x204   :  { %v1363_v60 = vpop.permute.xlu0 %1362 }
 0x205   :  { %v1373_v33 = vmax.f32 %v1353_v37, %v1363_v60  ;;  %1613 = vmatpush.bf16.msra.mxu1 %v1987_v61  ;;  %v1985_v60 = vld [vmem:[#allocation10 + $0x48] sm:$0xff] }
 0x206   :  { %1600 = vmatpush.bf16.msra.mxu0 %v1979_v9 }
 0x207   :  { %v1381_v32 = vrot.slane %v1373_v33, 1 }
 0x209   :  { %v1389_v2 = vmax.f32 %v1373_v33, %v1381_v32  ;;  %v1976_v33 = vld [vmem:[#allocation10] sm:$0xff] }
 0x20a   :  { %1601 = vmatpush.bf16.msra.mxu0 %v1978_v45  ;;  %v1984_v32 = vld [vmem:[#allocation10 + $0x40] sm:$0xff] }
 0x20b   :  { %1432 = vst.sshfl [vmem:[#allocation1 + $0x10] sm:$0xff pattern:$0x75316420] %v1389_v2  ;;  %v1396_v56 = vrot.slane %v1389_v2, 7  ;;  %v1416_v13 = vrot.slane %v1389_v2, 1  ;;  %v1999_v2 = vld [vmem:[#allocation12 + $0x38] sm:$0xff] }
 0x20c   :  { %v1367_v57 = vpop.permute.xlu0 %1366  ;;  %1692 = vmatpush.bf16.msra.mxu2 %v1999_v2 }
 0x20d   :  { %v1375_v50 = vmax.f32 %v1355_v11, %v1367_v57  ;;  %v1361_v21 = vpop.permute.xlu1 %1360  ;;  %v1998_v57 = vld [vmem:[#allocation12 + $0x30] sm:$0xff] }
 0x20e   :  { %v1372_v38 = vmax.f32 %v1352_v22, %v1361_v21  ;;  %1602 = vmatpush.bf16.msra.mxu0 %v1977_v18 }
 0x20f   :  { %v1383_v30 = vrot.slane %v1375_v50, 1 }
 0x210   :  { %v1380_v55 = vrot.slane %v1372_v38, 1  ;;  %1693 = vmatpush.bf16.msra.mxu2 %v1998_v57 }
 0x211   :  { %v1391_v62 = vmax.f32 %v1375_v50, %v1383_v30  ;;  %v456_v35 = vpop.permute.xlu2 %455 }
 0x212   :  { %v1388_v31 = vmax.f32 %v1372_v38, %v1380_v55  ;;  %v1434_v1 = vld [vmem:[#allocation1 + $0x11] ss:$2 sm:$0xff]  ;;  %1603 = vmatpush.bf16.msra.mxu0 %v1976_v33 }
 0x213   :  { %1438 = vst.sshfl [vmem:[#allocation1 + $0x30] sm:$0xff pattern:$0x75316420] %v1391_v62  ;;  %v1402_v42 = vrot.slane %v1391_v62, 5  ;;  %v1441_v47 = vrot.slane %v1434_v1, 7  ;;  %v1421_v41 = vrot.slane %v1391_v62, 7 }
 0x214   :  { %v1397_v37 = vsel %vm403_vm0, %v1396_v56, %v1388_v31  ;;  %v1415_v7 = vrot.slane %v1388_v31, 2  ;;  %1429 = vst.sshfl [vmem:[#allocation1] sm:$0xff pattern:$0x75316420] %v1388_v31  ;;  %v1997_v38 = vld [vmem:[#allocation12 + $0x28] sm:$0xff]  ;;  %v1996_v55 = vld [vmem:[#allocation12 + $0x20] sm:$0xff] }
 0x215   :  { %v1398_v6 = vsel %vm405_vm1, %v1396_v56, %v1397_v37  ;;  %1694 = vmatpush.bf16.msra.mxu2 %v1997_v38  ;;  %v1995_v31 = vld [vmem:[#allocation12 + $0x18] sm:$0xff]  ;;  %v2006_v1 = vld [vmem:[#allocation13 + $0x30] sm:$0xff] }
 0x216   :  { %v1417_v63 = vsel %vm403_vm0, %v1416_v13, %v1415_v7  ;;  %v1400_v11 = vsel %vm408_vm2, %v1399_v34, %v1398_v6 }
 0x217   :  { %v1401_v22 = vsel %vm410_vm3, %v1399_v34, %v1400_v11  ;;  %v1418_v51 = vsel %vm405_vm1, %v1416_v13, %v1417_v63  ;;  %v1994_v34 = vld [vmem:[#allocation12 + $0x10] sm:$0xff]  ;;  %v1993_v11 = vld [vmem:[#allocation12 + $0x8] sm:$0xff] }
 0x218   :  { %v1403_v15 = vsel %vm413_vm4, %v1402_v42, %v1401_v22  ;;  %v1419_v8 = vsel %vm408_vm2, %v1390_v46, %v1418_v51  ;;  %v2007_v22 = vld [vmem:[#allocation13 + $0x38] sm:$0xff]  ;;  %v2005_v51 = vld [vmem:[#allocation13 + $0x28] sm:$0xff] }
 0x219   :  { %v1404_v40 = vsel %vm415_vm5, %v1402_v42, %v1403_v15  ;;  %v1420_v59 = vsel %vm410_vm3, %v1390_v46, %v1419_v8  ;;  %v1986_v46 = vld [vmem:[#allocation10 + $0x50] sm:$0xff]  ;;  %1695 = vmatpush.bf16.msra.mxu2 %v1996_v55  ;;  %v1992_v42 = vld [vmem:[#allocation12] sm:$0xff]  ;;  %1775 = vmatpush.bf16.msra.mxu3 %v2007_v22  ;;  %v2003_v8 = vld [vmem:[#allocation13 + $0x18] sm:$0xff] }
 0x21a   :  { %1405 = vrot.lane.b32.xlu1 %v1404_v40, %s2217_s1  ;;  %v1440_v58 = vld [vmem:[#allocation1 + $0x31] ss:$2 sm:$0xff]  ;;  %v1422_v52 = vsel %vm413_vm4, %v1421_v41, %v1420_v59  ;;  %1614 = vmatpush.bf16.msra.mxu1 %v1986_v46  ;;  %v2002_v40 = vld [vmem:[#allocation13 + $0x10] sm:$0xff] }
 0x21b   :  { %v1431_v39 = vld [vmem:[#allocation1 + $0x1] ss:$2 sm:$0xff]  ;;  %v1447_v29 = vrot.slane %v1440_v58, 5  ;;  %v1423_v16 = vsel %vm415_vm5, %v1421_v41, %v1422_v52  ;;  %v2004_v15 = vld [vmem:[#allocation13 + $0x20] sm:$0xff]  ;;  %v2034_v52 = vld [vmem:[%s2973_s6] ss:$0 sm:$0xff] }
 0x21c   :  { %v1442_v4 = vsel %vm403_vm0, %v1441_v47, %v1431_v39  ;;  %vm1412_vm0 = vcmask 15364  }
 0x21d   :  { %v1443_v53 = vsel %vm405_vm1, %v1441_v47, %v1442_v4  ;;  %vm1408_vm1 = vcmask 957440   ;;  %1696 = vmatpush.bf16.msra.mxu2 %v1995_v31  ;;  %1776 = vmatpush.bf16.msra.mxu3 %v2006_v1 }
 0x21e   :  { %v1445_v12 = vsel %vm408_vm2, %v1444_v23, %v1443_v53  ;;  %1615 = vmatpush.bf16.msra.mxu1 %v1985_v60  ;;  %vm1413_vm2 = vmor %vm1412_vm0, %vm1411_vm15 }
 0x21f   :  { %v1446_v36 = vsel %vm410_vm3, %v1444_v23, %v1445_v12  ;;  %vm1427_vm3 = vcmask 117776   ;;  %v2001_v12 = vld [vmem:[#allocation13 + $0x8] sm:$0xff] }
 0x220   :  { %v1448_v14 = vsel %vm413_vm4, %v1447_v29, %v1446_v36  ;;  %vm1453_vm4 = vcmask 224376  }
 0x221   :  { %v1449_v48 = vsel %vm415_vm5, %v1447_v29, %v1448_v14  ;;  %v430_v26 = vpop.permute.xlu1 %429  ;;  %1697 = vmatpush.bf16.msra.mxu2 %v1994_v34  ;;  %1777 = vmatpush.bf16.msra.mxu3 %v2005_v51  ;;  %v2000_v29 = vld [vmem:[#allocation13] sm:$0xff] }
 0x222   :  { %1450 = vrot.lane.b32.xlu2 %v1449_v48, %s2218_s14  ;;  %1424 = vrot.lane.b32.xlu1 %v1423_v16, %s2219_s2  ;;  %433 = vst.msk [vmem:[#allocation2] sm:$0xf] %vm432_vm7, %v430_v26  ;;  %v786_v24 = vpop.permute.xlu2 %785 }
 0x223   :  { %459 = vst.msk [vmem:[#allocation2] sm:$0xf] %vm458_vm8, %v456_v35  ;;  %1616 = vmatpush.bf16.msra.mxu1 %v1984_v32  ;;  %v2035_v35 = vld [vmem:[%s2975_s8] ss:$0 sm:$0xff] }
 0x225   :  { %1698 = vmatpush.bf16.msra.mxu2 %v1993_v11  ;;  %1778 = vmatpush.bf16.msra.mxu3 %v2004_v15 }
 0x229   :  { %1699 = vmatpush.bf16.msra.mxu2 %v1992_v42  ;;  %1779 = vmatpush.bf16.msra.mxu3 %v2003_v8 }
 0x22d   :  { %1780 = vmatpush.bf16.msra.mxu3 %v2002_v40 }
 0x231   :  { %1781 = vmatpush.bf16.msra.mxu3 %v2001_v12 }
 0x232   :  { %v746_v3 = vpop.permute.xlu0 %745  ;;  %v760_v10 = vpop.permute.xlu1 %759 }
 0x233   :  { %749 = vst.msk [vmem:[#allocation2] sm:$0xf] %vm748_vm9, %v746_v3 }
 0x234   :  { %763 = vst.msk [vmem:[#allocation2] sm:$0xf] %vm762_vm10, %v760_v10 }
 0x235   :  { %789 = vst.msk [vmem:[#allocation2] sm:$0xf] %vm788_vm11, %v786_v24  ;;  %1782 = vmatpush.bf16.msra.mxu3 %v2000_v29 }
 0x24e   :  { %v1090_v0 = vpop.permute.xlu2 %1089 }
 0x264   :  { %v1076_v28 = vpop.permute.xlu0 %1075 }
 0x265   :  { %1079 = vst.msk [vmem:[#allocation2] sm:$0xf] %vm1078_vm12, %v1076_v28 }
 0x266   :  { %1093 = vst.msk [vmem:[#allocation2] sm:$0xf] %vm1092_vm13, %v1090_v0 }
 0x26c   :  { %v1116_v43 = vpop.permute.xlu0 %1115 }
 0x26d   :  { %1119 = vst.msk [vmem:[#allocation2] sm:$0xf] %vm1118_vm14, %v1116_v43 }
 0x27c   :  { %v1451_v56 = vpop.permute.xlu2 %1450 }
 0x28c   :  { %v1406_v50 = vpop.permute.xlu1 %1405 }
 0x28d   :  { %v1407_v21 = vrot.slane %v1406_v50, 4 }
 0x28f   :  { %v1409_v30 = vsel %vm1408_vm1, %v1407_v21, %v1406_v50 }
 0x290   :  { %1414 = vst.msk [vmem:[#allocation2] sm:$0xff] %vm1413_vm2, %v1409_v30 }
 0x294   :  { %v1425_v62 = vpop.permute.xlu1 %1424 }
 0x295   :  { %1428 = vst.msk [vmem:[#allocation2 + $0x4] sm:$0xf] %vm1427_vm3, %v1425_v62 }
 0x296   :  { %1454 = vst.msk [vmem:[#allocation2 + $0x4] sm:$0xf] %vm1453_vm4, %v1451_v56 }
 0x29d   :  { %v1455_v13 = vld [vmem:[#allocation2] sm:$0xff] }
 0x29e   :  { %1457 = vst [vmem:[#allocation1] ss:$2 sm:$0xff] %v1455_v13 }
 0x2a5   :  { %v1458_v37 = vld.sshfl [vmem:[#allocation1] sm:$0xff pattern:$0x75316420]  ;;  %v1459_v7 = vld.sshfl [vmem:[#allocation1 + $0x8] sm:$0xff pattern:$0x75316420] }
 0x2a6   :  { %v1462_v6 = vpack.c.bf16 %v1458_v37, %v1458_v37  ;;  %v1463_v63 = vpack.c.bf16 %v1459_v7, %v1459_v7 }
 0x2a8   :  { %1604 = vmatmul.bf16.vlgmr.msra.gmra.mxu0 %v1462_v6  ;;  %1617 = vmatmul.bf16.vlgmr.msra.gmra.mxu1 %v1463_v63 }
 0x325   :  { %v1605_v47 = vpop.f32.mrf.mxu0  ;;  %v1618_v39 = vpop.f32.mrf.mxu1 }
 0x326   :  { %v1606_v58 = vadd.f32 %v2033_v19, %v1605_v47 }
 0x328   :  { %v1619_v59 = vadd.f32 %v1618_v39, %v1606_v58 }
 0x32a   :  { %v1622_v4 = vmax.f32 %v1619_v59, 0.0 }
 0x32c   :  { %v1623_v23 = vpack.c.bf16 %v1622_v4, %v1622_v4 }
 0x32d   :  { %v1607_v41 = vpop.f32.mrf.mxu0  ;;  %v1620_v53 = vpop.f32.mrf.mxu1 }
 0x32e   :  { %1700 = vmatmul.bf16.vlgmr.msra.gmra.mxu2 %v1623_v23 }
 0x3b1   :  { %v1701_v36 = vpop.f32.mrf.mxu2 }
 0x3b2   :  { %v1702_v14 = vadd.f32 %v2034_v52, %v1701_v36 }
 0x3b4   :  { %v1705_v48 = vmax.f32 %v1702_v14, 0.0 }
 0x3b6   :  { %v1706_v16 = vpack.c.bf16 %v1705_v48, %v1705_v48 }
 0x3b8   :  { %1783 = vmatmul.bf16.vlgmr.msra.gmra.mxu3 %v1706_v16 }
 0x3b9   :  { %v1703_v26 = vpop.f32.mrf.mxu2 }
 0x43b   :  { %v1784_v3 = vpop.f32.mrf.mxu3 }
 0x43c   :  { %v1785_v10 = vadd.f32 %v2035_v35, %v1784_v3 }
 0x43e   :  { %1788 = vst [vmem:[#allocation15] sm:$0xf] %v1785_v10 }
 0x43f   :  { %1799 = dma.vmem_to_hbm [thread:$0]  %s1795_s3, 64, %s1797_s23, [#allocation5]  }
 0x443   :  { %v1786_v24 = vpop.f32.mrf.mxu3 }
 0x444   :  { %2194 = dma.done.wait [#allocation5], 64  }
 0x445   :  { %2195 = vsyncadd [#allocation5], 4294967232 }
 0x446   :  { %1804 = vsyncpa [#allocation4], 1 }
 0x447   :  { %1805 = vsyncpa [#allocation11], 1 }
 0x448   :  { %1806 = vsyncpa [#allocation14], 1 }
 0x449   :  { %1807 = vsyncpa [#allocation5], 1 }
 0x44a   :  { %1808 = vsyncpa [#allocation6], 1 }
 0x44b   :  { %1809 = vsyncpa [#allocation7], 1 }

</bundles_post_ra>
